<compile_context>
chip_gen: v5e
topology: v5e:2x2
jax: 0.10.0
libtpu: 0.0.40
codegen_flags: <defaults>
</compile_context>

<pallas_src>
import math

import jax
import jax.numpy as jnp
from jax.experimental import pallas as pl
from jax.experimental.pallas import tpu as pltpu


# ----------------------------------------------------------------------------
# Fused SIGN forward kernel (built per static (num_hops, n_layers) config)
# ----------------------------------------------------------------------------
def _prelu(y, a):
    return jnp.where(y >= 0.0, y, a * y)


def _build_sign_kernel(num_hops, n_layers):
    """Kernel ref order:
       alphas (SMEM), feats, [inc_w_l, inc_b_l]*n_layers,
       [proj_w_l, proj_b_l]*n_layers, out."""

    def kernel(alphas_ref, feats_ref, *refs):
        idx = 0
        inc_w, inc_b = [], []
        for _ in range(n_layers):
            inc_w.append(refs[idx]); inc_b.append(refs[idx + 1]); idx += 2
        proj_w, proj_b = [], []
        for _ in range(n_layers):
            proj_w.append(refs[idx]); proj_b.append(refs[idx + 1]); idx += 2
        out_ref = refs[idx]

        a_proj = alphas_ref[num_hops]       # project-FFN PReLU alpha
        a_sign = alphas_ref[num_hops + 1]   # SIGN-level PReLU alpha

        # --- inception FFNs, fused with the first project-layer matmul ------
        acc = None
        for h in range(num_hops):                       # static unroll
            x = feats_ref[h]                            # (tm, in_feats) bf16
            y = None
            for l in range(n_layers):                   # static unroll
                y = jnp.dot(x, inc_w[l][h],
                            preferred_element_type=jnp.float32)
                y = y + inc_b[l][h]                     # (1, fout) f32 bcast
                if l < n_layers - 1:                    # PReLU (not after last)
                    y = _prelu(y, alphas_ref[h])
                    x = y.astype(jnp.bfloat16)
            hh = _prelu(y, a_sign)                      # SIGN PReLU (per slice)
            contrib = jnp.dot(hh.astype(jnp.bfloat16), proj_w[0][h],
                              preferred_element_type=jnp.float32)
            acc = contrib if acc is None else acc + contrib   # replaces concat

        # --- rest of the project FFN ----------------------------------------
        y = acc + proj_b[0][...]
        if n_layers > 1:
            y = _prelu(y, a_proj)
            x = y.astype(jnp.bfloat16)
            for l in range(1, n_layers):
                y = jnp.dot(x, proj_w[l][...],
                            preferred_element_type=jnp.float32)
                y = y + proj_b[l][...]
                if l < n_layers - 1:
                    y = _prelu(y, a_proj)
                    x = y.astype(jnp.bfloat16)
        out_ref[...] = y                                # f32, lane-dense

    return kernel


# ----------------------------------------------------------------------------
# Wrapper: stack / cast parameters, build specs, single pallas_call
# ----------------------------------------------------------------------------
def sign_forward(feats, params, *, tm=128):
    num_hops = len(params["inception"])
    n_layers = len(params["inception"][0]["layers"])
    assert len(feats) == num_hops
    N, in_feats = feats[0].shape
    hidden = params["inception"][0]["layers"][-1][0].shape[1]
    out_feats = params["project"]["layers"][-1][0].shape[1]

    # Row padding so the (8,128)-friendly row tile divides N.
    n_tiles = pl.cdiv(N, tm)
    n_pad = n_tiles * tm

    feats_arr = jnp.stack(feats, axis=0).astype(jnp.bfloat16)   # (H, N, in)
    if n_pad != N:
        feats_arr = jnp.pad(feats_arr, ((0, 0), (0, n_pad - N), (0, 0)))

    def full_spec(a):
        nd = a.ndim
        return pl.BlockSpec(a.shape, lambda i, nd=nd: (0,) * nd)

    args, specs = [], []

    # Inception layer params stacked across hops.
    for l in range(n_layers):
        w = jnp.stack([params["inception"][h]["layers"][l][0]
                       for h in range(num_hops)], 0).astype(jnp.bfloat16)
        b = jnp.stack([params["inception"][h]["layers"][l][1]
                       for h in range(num_hops)], 0)
        b = b.reshape(num_hops, 1, -1).astype(jnp.float32)
        args += [w, b]
        specs += [full_spec(w), full_spec(b)]

    # Project layer params; layer 0 split per hop (replaces concatenate).
    out_pad = ((out_feats + 127) // 128) * 128          # lane-dense output
    proj_layers = params["project"]["layers"]
    pw0, pb0 = proj_layers[0]
    f0_out = pw0.shape[1]
    pw0 = pw0.reshape(num_hops, hidden, f0_out)
    if n_layers == 1 and out_pad != f0_out:
        pw0 = jnp.pad(pw0, ((0, 0), (0, 0), (0, out_pad - f0_out)))
        pb0 = jnp.pad(pb0, (0, out_pad - f0_out))
    pw0 = pw0.astype(jnp.bfloat16)
    pb0 = pb0.reshape(1, -1).astype(jnp.float32)
    args += [pw0, pb0]
    specs += [full_spec(pw0), full_spec(pb0)]
    for l in range(1, n_layers):
        w, b = proj_layers[l]
        if l == n_layers - 1 and out_pad != w.shape[1]:
            w = jnp.pad(w, ((0, 0), (0, out_pad - w.shape[1])))
            b = jnp.pad(b, (0, out_pad - b.shape[0]))
        w = w.astype(jnp.bfloat16)
        b = b.reshape(1, -1).astype(jnp.float32)
        args += [w, b]
        specs += [full_spec(w), full_spec(b)]

    # PReLU alphas packed into one SMEM vector:
    # [hop_0 .. hop_{H-1}, project, sign-level]
    alphas = jnp.concatenate([
        jnp.stack([jnp.asarray(params["inception"][h]["prelu"], jnp.float32)
                   for h in range(num_hops)]),
        jnp.reshape(jnp.asarray(params["project"]["prelu"], jnp.float32), (1,)),
        jnp.reshape(jnp.asarray(params["sign_prelu"], jnp.float32), (1,)),
    ])

    kernel = _build_sign_kernel(num_hops, n_layers)
    out = pl.pallas_call(
        kernel,
        out_shape=jax.ShapeDtypeStruct((n_pad, out_pad), jnp.float32),
        grid=(n_tiles,),
        in_specs=[pl.BlockSpec(memory_space=pltpu.SMEM),            # alphas
                  pl.BlockSpec((num_hops, tm, in_feats),
                               lambda i: (0, i, 0))]                # feats tile
                 + specs,
        out_specs=pl.BlockSpec((tm, out_pad), lambda i: (i, 0)),
        compiler_params=pltpu.CompilerParams(
            dimension_semantics=("parallel",)),
    )(alphas, feats_arr, *args)

    return out[:N, :out_feats]


# ----------------------------------------------------------------------------
# Parameter init (matches FeedForwardNet.reset_parameters: xavier_uniform with
# gain = calculate_gain('relu') = sqrt(2), zero bias, PReLU alpha = 0.25)
# ----------------------------------------------------------------------------
def _xavier_uniform(key, fan_in, fan_out, gain):
    bound = gain * math.sqrt(6.0 / (fan_in + fan_out))
    return jax.random.uniform(key, (fan_in, fan_out), jnp.float32, -bound, bound)


def init_ffn(key, in_feats, hidden, out_feats, n_layers):
    gain = math.sqrt(2.0)
    if n_layers == 1:
        dims = [(in_feats, out_feats)]
    else:
        dims = ([(in_feats, hidden)]
                + [(hidden, hidden)] * (n_layers - 2)
                + [(hidden, out_feats)])
    keys = jax.random.split(key, len(dims))
    layers = []
    for k, (fi, fo) in zip(keys, dims):
        layers.append((_xavier_uniform(k, fi, fo, gain),
                       jnp.zeros((fo,), jnp.float32)))
    return {"layers": layers, "prelu": jnp.float32(0.25)}


def init_sign(key, in_feats, hidden, out_feats, num_hops, n_layers):
    keys = jax.random.split(key, num_hops + 1)
    return {
        "inception": [init_ffn(keys[h], in_feats, hidden, hidden, n_layers)
                      for h in range(num_hops)],
        "project": init_ffn(keys[-1], num_hops * hidden, hidden, out_feats,
                            n_layers),
        "sign_prelu": jnp.float32(0.25),
    }


# ----------------------------------------------------------------------------
# Pure-JAX reference (f32) for a sanity check
# ----------------------------------------------------------------------------
def _sign_reference(feats, params):
    n_layers = len(params["inception"][0]["layers"])

    def ffn(x, p):
        for i, (w, b) in enumerate(p["layers"]):
            x = x @ w + b
            if i < n_layers - 1:
                x = jnp.where(x >= 0, x, p["prelu"] * x)
        return x

    hs = [ffn(f, p) for f, p in zip(feats, params["inception"])]
    h = jnp.concatenate(hs, axis=-1)
    h = jnp.where(h >= 0, h, params["sign_prelu"] * h)
    return ffn(h, params["project"])


# ----------------------------------------------------------------------------
if __name__ == "__main__":
    N = 256           # number of nodes
    in_feats = 128
    hidden = 64
    out_feats = 32
    num_hops = 3
    n_layers = 2

    key = jax.random.PRNGKey(0)
    k_params, k_data = jax.random.split(key)
    params = init_sign(k_params, in_feats, hidden, out_feats, num_hops,
                       n_layers)

    data_keys = jax.random.split(k_data, num_hops)
    feats = [jax.random.normal(dk, (N, in_feats), jnp.float32)
             for dk in data_keys]

    out = sign_forward(feats, params)
    out = jax.block_until_ready(out)
    assert out.shape == (N, out_feats), out.shape
    assert out.dtype == jnp.float32

    # Sanity check vs f32 reference (kernel uses bf16 matmul inputs, so allow
    # a generous absolute tolerance).
    ref = _sign_reference(feats, params)
    max_err = float(jnp.max(jnp.abs(out - ref)))
    assert max_err < 0.5, f"mismatch vs reference: max abs err {max_err}"

    print("KERNEL_OK")
</pallas_src>

<mosaic_0001>
module attributes {stable_mosaic.version = 11 : i64} {
  func.func @kernel(%arg0: i32, %arg1: memref<5xf32, #tpu.memory_space<smem>>, %arg2: memref<3x128x128xbf16, #tpu.memory_space<vmem>>, %arg3: memref<3x128x64xbf16, #tpu.memory_space<vmem>>, %arg4: memref<3x1x64xf32, #tpu.memory_space<vmem>>, %arg5: memref<3x64x64xbf16, #tpu.memory_space<vmem>>, %arg6: memref<3x1x64xf32, #tpu.memory_space<vmem>>, %arg7: memref<3x64x64xbf16, #tpu.memory_space<vmem>>, %arg8: memref<1x64xf32, #tpu.memory_space<vmem>>, %arg9: memref<64x128xbf16, #tpu.memory_space<vmem>>, %arg10: memref<1x128xf32, #tpu.memory_space<vmem>>, %arg11: memref<128x128xf32, #tpu.memory_space<vmem>>) attributes {dimension_semantics = [#tpu.dimension_semantics<parallel>], iteration_bounds = array<i64: 2>, scalar_prefetch = 0 : i64, scratch_operands = 0 : i64, tpu.core_type = #tpu.core_type<tc>, window_params = [{transform_indices = @transform_0, window_bounds = array<i64: 5>}, {transform_indices = @transform_1, window_bounds = array<i64: 3, 128, 128>}, {pipeline_mode = #tpu.pipeline_mode<synchronous>, transform_indices = @transform_2, window_bounds = array<i64: 3, 128, 64>}, {pipeline_mode = #tpu.pipeline_mode<synchronous>, transform_indices = @transform_3, window_bounds = array<i64: 3, 1, 64>}, {pipeline_mode = #tpu.pipeline_mode<synchronous>, transform_indices = @transform_4, window_bounds = array<i64: 3, 64, 64>}, {pipeline_mode = #tpu.pipeline_mode<synchronous>, transform_indices = @transform_5, window_bounds = array<i64: 3, 1, 64>}, {pipeline_mode = #tpu.pipeline_mode<synchronous>, transform_indices = @transform_6, window_bounds = array<i64: 3, 64, 64>}, {pipeline_mode = #tpu.pipeline_mode<synchronous>, transform_indices = @transform_7, window_bounds = array<i64: 1, 64>}, {pipeline_mode = #tpu.pipeline_mode<synchronous>, transform_indices = @transform_8, window_bounds = array<i64: 64, 128>}, {pipeline_mode = #tpu.pipeline_mode<synchronous>, transform_indices = @transform_9, window_bounds = array<i64: 1, 128>}, {transform_indices = @transform_10, window_bounds = array<i64: 128, 128>}]} {
    %c3 = arith.constant 3 : index
    %0 = memref.load %arg1[%c3] : memref<5xf32, #tpu.memory_space<smem>>
    %c4 = arith.constant 4 : index
    %1 = memref.load %arg1[%c4] : memref<5xf32, #tpu.memory_space<smem>>
    %c0 = arith.constant 0 : index
    %c0_0 = arith.constant 0 : index
    %c0_1 = arith.constant 0 : index
    %2 = vector.load %arg2[%c0, %c0_0, %c0_1] : memref<3x128x128xbf16, #tpu.memory_space<vmem>>, vector<1x128x128xbf16>
    %3 = vector.shape_cast %2 : vector<1x128x128xbf16> to vector<128x128xbf16>
    %c0_2 = arith.constant 0 : index
    %c0_3 = arith.constant 0 : index
    %c0_4 = arith.constant 0 : index
    %4 = vector.load %arg3[%c0_2, %c0_3, %c0_4] : memref<3x128x64xbf16, #tpu.memory_space<vmem>>, vector<1x128x64xbf16>
    %5 = vector.shape_cast %4 : vector<1x128x64xbf16> to vector<128x64xbf16>
    %cst = arith.constant dense<0.000000e+00> : vector<128x64xf32>
    %6 = tpu.matmul %3, %5, %cst {dimension_numbers = #tpu.dot_dimension_numbers<[1], [0], [0], [1], [0, 0, 1, 1], [], []>} : vector<128x128xbf16>, vector<128x64xbf16>, vector<128x64xf32> -> vector<128x64xf32>
    %c0_5 = arith.constant 0 : index
    %c0_6 = arith.constant 0 : index
    %c0_7 = arith.constant 0 : index
    %7 = vector.load %arg4[%c0_5, %c0_6, %c0_7] : memref<3x1x64xf32, #tpu.memory_space<vmem>>, vector<1x1x64xf32>
    %8 = vector.shape_cast %7 : vector<1x1x64xf32> to vector<1x64xf32>
    %9 = vector.broadcast %8 : vector<1x64xf32> to vector<128x64xf32>
    %10 = arith.addf %6, %9 : vector<128x64xf32>
    %c0_8 = arith.constant 0 : index
    %11 = memref.load %arg1[%c0_8] : memref<5xf32, #tpu.memory_space<smem>>
    %cst_9 = arith.constant 0.000000e+00 : f32
    %12 = vector.broadcast %cst_9 : f32 to vector<128x64xf32>
    %13 = arith.cmpf oge, %10, %12 : vector<128x64xf32>
    %14 = vector.broadcast %11 : f32 to vector<128x64xf32>
    %15 = arith.mulf %14, %10 : vector<128x64xf32>
    %16 = arith.select %13, %10, %15 : vector<128x64xi1>, vector<128x64xf32>
    %17 = arith.truncf %16 : vector<128x64xf32> to vector<128x64xbf16>
    %c0_10 = arith.constant 0 : index
    %c0_11 = arith.constant 0 : index
    %c0_12 = arith.constant 0 : index
    %18 = vector.load %arg5[%c0_10, %c0_11, %c0_12] : memref<3x64x64xbf16, #tpu.memory_space<vmem>>, vector<1x64x64xbf16>
    %19 = vector.shape_cast %18 : vector<1x64x64xbf16> to vector<64x64xbf16>
    %cst_13 = arith.constant dense<0.000000e+00> : vector<128x64xf32>
    %20 = tpu.matmul %17, %19, %cst_13 {dimension_numbers = #tpu.dot_dimension_numbers<[1], [0], [0], [1], [0, 0, 1, 1], [], []>} : vector<128x64xbf16>, vector<64x64xbf16>, vector<128x64xf32> -> vector<128x64xf32>
    %c0_14 = arith.constant 0 : index
    %c0_15 = arith.constant 0 : index
    %c0_16 = arith.constant 0 : index
    %21 = vector.load %arg6[%c0_14, %c0_15, %c0_16] : memref<3x1x64xf32, #tpu.memory_space<vmem>>, vector<1x1x64xf32>
    %22 = vector.shape_cast %21 : vector<1x1x64xf32> to vector<1x64xf32>
    %23 = vector.broadcast %22 : vector<1x64xf32> to vector<128x64xf32>
    %24 = arith.addf %20, %23 : vector<128x64xf32>
    %cst_17 = arith.constant 0.000000e+00 : f32
    %25 = vector.broadcast %cst_17 : f32 to vector<128x64xf32>
    %26 = arith.cmpf oge, %24, %25 : vector<128x64xf32>
    %27 = vector.broadcast %1 : f32 to vector<128x64xf32>
    %28 = arith.mulf %27, %24 : vector<128x64xf32>
    %29 = arith.select %26, %24, %28 : vector<128x64xi1>, vector<128x64xf32>
    %30 = arith.truncf %29 : vector<128x64xf32> to vector<128x64xbf16>
    %c0_18 = arith.constant 0 : index
    %c0_19 = arith.constant 0 : index
    %c0_20 = arith.constant 0 : index
    %31 = vector.load %arg7[%c0_18, %c0_19, %c0_20] : memref<3x64x64xbf16, #tpu.memory_space<vmem>>, vector<1x64x64xbf16>
    %32 = vector.shape_cast %31 : vector<1x64x64xbf16> to vector<64x64xbf16>
    %cst_21 = arith.constant dense<0.000000e+00> : vector<128x64xf32>
    %33 = tpu.matmul %30, %32, %cst_21 {dimension_numbers = #tpu.dot_dimension_numbers<[1], [0], [0], [1], [0, 0, 1, 1], [], []>} : vector<128x64xbf16>, vector<64x64xbf16>, vector<128x64xf32> -> vector<128x64xf32>
    %c1 = arith.constant 1 : index
    %c0_22 = arith.constant 0 : index
    %c0_23 = arith.constant 0 : index
    %34 = vector.load %arg2[%c1, %c0_22, %c0_23] : memref<3x128x128xbf16, #tpu.memory_space<vmem>>, vector<1x128x128xbf16>
    %35 = vector.shape_cast %34 : vector<1x128x128xbf16> to vector<128x128xbf16>
    %c1_24 = arith.constant 1 : index
    %c0_25 = arith.constant 0 : index
    %c0_26 = arith.constant 0 : index
    %36 = vector.load %arg3[%c1_24, %c0_25, %c0_26] : memref<3x128x64xbf16, #tpu.memory_space<vmem>>, vector<1x128x64xbf16>
    %37 = vector.shape_cast %36 : vector<1x128x64xbf16> to vector<128x64xbf16>
    %cst_27 = arith.constant dense<0.000000e+00> : vector<128x64xf32>
    %38 = tpu.matmul %35, %37, %cst_27 {dimension_numbers = #tpu.dot_dimension_numbers<[1], [0], [0], [1], [0, 0, 1, 1], [], []>} : vector<128x128xbf16>, vector<128x64xbf16>, vector<128x64xf32> -> vector<128x64xf32>
    %c1_28 = arith.constant 1 : index
    %c0_29 = arith.constant 0 : index
    %c0_30 = arith.constant 0 : index
    %39 = vector.load %arg4[%c1_28, %c0_29, %c0_30] : memref<3x1x64xf32, #tpu.memory_space<vmem>>, vector<1x1x64xf32>
    %40 = vector.shape_cast %39 : vector<1x1x64xf32> to vector<1x64xf32>
    %41 = vector.broadcast %40 : vector<1x64xf32> to vector<128x64xf32>
    %42 = arith.addf %38, %41 : vector<128x64xf32>
    %c1_31 = arith.constant 1 : index
    %43 = memref.load %arg1[%c1_31] : memref<5xf32, #tpu.memory_space<smem>>
    %cst_32 = arith.constant 0.000000e+00 : f32
    %44 = vector.broadcast %cst_32 : f32 to vector<128x64xf32>
    %45 = arith.cmpf oge, %42, %44 : vector<128x64xf32>
    %46 = vector.broadcast %43 : f32 to vector<128x64xf32>
    %47 = arith.mulf %46, %42 : vector<128x64xf32>
    %48 = arith.select %45, %42, %47 : vector<128x64xi1>, vector<128x64xf32>
    %49 = arith.truncf %48 : vector<128x64xf32> to vector<128x64xbf16>
    %c1_33 = arith.constant 1 : index
    %c0_34 = arith.constant 0 : index
    %c0_35 = arith.constant 0 : index
    %50 = vector.load %arg5[%c1_33, %c0_34, %c0_35] : memref<3x64x64xbf16, #tpu.memory_space<vmem>>, vector<1x64x64xbf16>
    %51 = vector.shape_cast %50 : vector<1x64x64xbf16> to vector<64x64xbf16>
    %cst_36 = arith.constant dense<0.000000e+00> : vector<128x64xf32>
    %52 = tpu.matmul %49, %51, %cst_36 {dimension_numbers = #tpu.dot_dimension_numbers<[1], [0], [0], [1], [0, 0, 1, 1], [], []>} : vector<128x64xbf16>, vector<64x64xbf16>, vector<128x64xf32> -> vector<128x64xf32>
    %c1_37 = arith.constant 1 : index
    %c0_38 = arith.constant 0 : index
    %c0_39 = arith.constant 0 : index
    %53 = vector.load %arg6[%c1_37, %c0_38, %c0_39] : memref<3x1x64xf32, #tpu.memory_space<vmem>>, vector<1x1x64xf32>
    %54 = vector.shape_cast %53 : vector<1x1x64xf32> to vector<1x64xf32>
    %55 = vector.broadcast %54 : vector<1x64xf32> to vector<128x64xf32>
    %56 = arith.addf %52, %55 : vector<128x64xf32>
    %cst_40 = arith.constant 0.000000e+00 : f32
    %57 = vector.broadcast %cst_40 : f32 to vector<128x64xf32>
    %58 = arith.cmpf oge, %56, %57 : vector<128x64xf32>
    %59 = vector.broadcast %1 : f32 to vector<128x64xf32>
    %60 = arith.mulf %59, %56 : vector<128x64xf32>
    %61 = arith.select %58, %56, %60 : vector<128x64xi1>, vector<128x64xf32>
    %62 = arith.truncf %61 : vector<128x64xf32> to vector<128x64xbf16>
    %c1_41 = arith.constant 1 : index
    %c0_42 = arith.constant 0 : index
    %c0_43 = arith.constant 0 : index
    %63 = vector.load %arg7[%c1_41, %c0_42, %c0_43] : memref<3x64x64xbf16, #tpu.memory_space<vmem>>, vector<1x64x64xbf16>
    %64 = vector.shape_cast %63 : vector<1x64x64xbf16> to vector<64x64xbf16>
    %cst_44 = arith.constant dense<0.000000e+00> : vector<128x64xf32>
    %65 = tpu.matmul %62, %64, %cst_44 {dimension_numbers = #tpu.dot_dimension_numbers<[1], [0], [0], [1], [0, 0, 1, 1], [], []>} : vector<128x64xbf16>, vector<64x64xbf16>, vector<128x64xf32> -> vector<128x64xf32>
    %66 = arith.addf %33, %65 : vector<128x64xf32>
    %c2 = arith.constant 2 : index
    %c0_45 = arith.constant 0 : index
    %c0_46 = arith.constant 0 : index
    %67 = vector.load %arg2[%c2, %c0_45, %c0_46] : memref<3x128x128xbf16, #tpu.memory_space<vmem>>, vector<1x128x128xbf16>
    %68 = vector.shape_cast %67 : vector<1x128x128xbf16> to vector<128x128xbf16>
    %c2_47 = arith.constant 2 : index
    %c0_48 = arith.constant 0 : index
    %c0_49 = arith.constant 0 : index
    %69 = vector.load %arg3[%c2_47, %c0_48, %c0_49] : memref<3x128x64xbf16, #tpu.memory_space<vmem>>, vector<1x128x64xbf16>
    %70 = vector.shape_cast %69 : vector<1x128x64xbf16> to vector<128x64xbf16>
    %cst_50 = arith.constant dense<0.000000e+00> : vector<128x64xf32>
    %71 = tpu.matmul %68, %70, %cst_50 {dimension_numbers = #tpu.dot_dimension_numbers<[1], [0], [0], [1], [0, 0, 1, 1], [], []>} : vector<128x128xbf16>, vector<128x64xbf16>, vector<128x64xf32> -> vector<128x64xf32>
    %c2_51 = arith.constant 2 : index
    %c0_52 = arith.constant 0 : index
    %c0_53 = arith.constant 0 : index
    %72 = vector.load %arg4[%c2_51, %c0_52, %c0_53] : memref<3x1x64xf32, #tpu.memory_space<vmem>>, vector<1x1x64xf32>
    %73 = vector.shape_cast %72 : vector<1x1x64xf32> to vector<1x64xf32>
    %74 = vector.broadcast %73 : vector<1x64xf32> to vector<128x64xf32>
    %75 = arith.addf %71, %74 : vector<128x64xf32>
    %c2_54 = arith.constant 2 : index
    %76 = memref.load %arg1[%c2_54] : memref<5xf32, #tpu.memory_space<smem>>
    %cst_55 = arith.constant 0.000000e+00 : f32
    %77 = vector.broadcast %cst_55 : f32 to vector<128x64xf32>
    %78 = arith.cmpf oge, %75, %77 : vector<128x64xf32>
    %79 = vector.broadcast %76 : f32 to vector<128x64xf32>
    %80 = arith.mulf %79, %75 : vector<128x64xf32>
    %81 = arith.select %78, %75, %80 : vector<128x64xi1>, vector<128x64xf32>
    %82 = arith.truncf %81 : vector<128x64xf32> to vector<128x64xbf16>
    %c2_56 = arith.constant 2 : index
    %c0_57 = arith.constant 0 : index
    %c0_58 = arith.constant 0 : index
    %83 = vector.load %arg5[%c2_56, %c0_57, %c0_58] : memref<3x64x64xbf16, #tpu.memory_space<vmem>>, vector<1x64x64xbf16>
    %84 = vector.shape_cast %83 : vector<1x64x64xbf16> to vector<64x64xbf16>
    %cst_59 = arith.constant dense<0.000000e+00> : vector<128x64xf32>
    %85 = tpu.matmul %82, %84, %cst_59 {dimension_numbers = #tpu.dot_dimension_numbers<[1], [0], [0], [1], [0, 0, 1, 1], [], []>} : vector<128x64xbf16>, vector<64x64xbf16>, vector<128x64xf32> -> vector<128x64xf32>
    %c2_60 = arith.constant 2 : index
    %c0_61 = arith.constant 0 : index
    %c0_62 = arith.constant 0 : index
    %86 = vector.load %arg6[%c2_60, %c0_61, %c0_62] : memref<3x1x64xf32, #tpu.memory_space<vmem>>, vector<1x1x64xf32>
    %87 = vector.shape_cast %86 : vector<1x1x64xf32> to vector<1x64xf32>
    %88 = vector.broadcast %87 : vector<1x64xf32> to vector<128x64xf32>
    %89 = arith.addf %85, %88 : vector<128x64xf32>
    %cst_63 = arith.constant 0.000000e+00 : f32
    %90 = vector.broadcast %cst_63 : f32 to vector<128x64xf32>
    %91 = arith.cmpf oge, %89, %90 : vector<128x64xf32>
    %92 = vector.broadcast %1 : f32 to vector<128x64xf32>
    %93 = arith.mulf %92, %89 : vector<128x64xf32>
    %94 = arith.select %91, %89, %93 : vector<128x64xi1>, vector<128x64xf32>
    %95 = arith.truncf %94 : vector<128x64xf32> to vector<128x64xbf16>
    %c2_64 = arith.constant 2 : index
    %c0_65 = arith.constant 0 : index
    %c0_66 = arith.constant 0 : index
    %96 = vector.load %arg7[%c2_64, %c0_65, %c0_66] : memref<3x64x64xbf16, #tpu.memory_space<vmem>>, vector<1x64x64xbf16>
    %97 = vector.shape_cast %96 : vector<1x64x64xbf16> to vector<64x64xbf16>
    %cst_67 = arith.constant dense<0.000000e+00> : vector<128x64xf32>
    %98 = tpu.matmul %95, %97, %cst_67 {dimension_numbers = #tpu.dot_dimension_numbers<[1], [0], [0], [1], [0, 0, 1, 1], [], []>} : vector<128x64xbf16>, vector<64x64xbf16>, vector<128x64xf32> -> vector<128x64xf32>
    %99 = arith.addf %66, %98 : vector<128x64xf32>
    %c0_68 = arith.constant 0 : index
    %c0_69 = arith.constant 0 : index
    %100 = vector.load %arg8[%c0_68, %c0_69] : memref<1x64xf32, #tpu.memory_space<vmem>>, vector<1x64xf32>
    %101 = vector.broadcast %100 : vector<1x64xf32> to vector<128x64xf32>
    %102 = arith.addf %99, %101 : vector<128x64xf32>
    %cst_70 = arith.constant 0.000000e+00 : f32
    %103 = vector.broadcast %cst_70 : f32 to vector<128x64xf32>
    %104 = arith.cmpf oge, %102, %103 : vector<128x64xf32>
    %105 = vector.broadcast %0 : f32 to vector<128x64xf32>
    %106 = arith.mulf %105, %102 : vector<128x64xf32>
    %107 = arith.select %104, %102, %106 : vector<128x64xi1>, vector<128x64xf32>
    %108 = arith.truncf %107 : vector<128x64xf32> to vector<128x64xbf16>
    %c0_71 = arith.constant 0 : index
    %c0_72 = arith.constant 0 : index
    %109 = vector.load %arg9[%c0_71, %c0_72] : memref<64x128xbf16, #tpu.memory_space<vmem>>, vector<64x128xbf16>
    %cst_73 = arith.constant dense<0.000000e+00> : vector<128x128xf32>
    %110 = tpu.matmul %108, %109, %cst_73 {dimension_numbers = #tpu.dot_dimension_numbers<[1], [0], [0], [1], [0, 0, 1, 1], [], []>} : vector<128x64xbf16>, vector<64x128xbf16>, vector<128x128xf32> -> vector<128x128xf32>
    %c0_74 = arith.constant 0 : index
    %c0_75 = arith.constant 0 : index
    %111 = vector.load %arg10[%c0_74, %c0_75] : memref<1x128xf32, #tpu.memory_space<vmem>>, vector<1x128xf32>
    %112 = vector.broadcast %111 : vector<1x128xf32> to vector<128x128xf32>
    %113 = arith.addf %110, %112 : vector<128x128xf32>
    %c0_76 = arith.constant 0 : index
    %c0_77 = arith.constant 0 : index
    %114 = vector.load %arg11[%c0_76, %c0_77] : memref<128x128xf32, #tpu.memory_space<vmem>>, vector<128x128xf32>
    tpu.vector_store %arg11[%c0_76, %c0_77], %113 {strides = array<i32>} : memref<128x128xf32, #tpu.memory_space<vmem>>, vector<128x128xf32>,
    return
  }
  func.func @transform_0(%arg0: i32) -> i32 {
    %c0_i32 = arith.constant 0 : i32
    %c0_i32_0 = arith.constant 0 : i32
    return %c0_i32 : i32
  }
  func.func @transform_1(%arg0: i32) -> (i32, i32, i32) {
    %c0_i32 = arith.constant 0 : i32
    %c0_i32_0 = arith.constant 0 : i32
    %c0_i32_1 = arith.constant 0 : i32
    return %c0_i32, %arg0, %c0_i32_0 : i32, i32, i32
  }
  func.func @transform_2(%arg0: i32) -> (i32, i32, i32) {
    %c0_i32 = arith.constant 0 : i32
    %c0_i32_0 = arith.constant 0 : i32
    %c0_i32_1 = arith.constant 0 : i32
    %c0_i32_2 = arith.constant 0 : i32
    return %c0_i32, %c0_i32_0, %c0_i32_1 : i32, i32, i32
  }
  func.func @transform_3(%arg0: i32) -> (i32, i32, i32) {
    %c0_i32 = arith.constant 0 : i32
    %c0_i32_0 = arith.constant 0 : i32
    %c0_i32_1 = arith.constant 0 : i32
    %c0_i32_2 = arith.constant 0 : i32
    return %c0_i32, %c0_i32_0, %c0_i32_1 : i32, i32, i32
  }
  func.func @transform_4(%arg0: i32) -> (i32, i32, i32) {
    %c0_i32 = arith.constant 0 : i32
    %c0_i32_0 = arith.constant 0 : i32
    %c0_i32_1 = arith.constant 0 : i32
    %c0_i32_2 = arith.constant 0 : i32
    return %c0_i32, %c0_i32_0, %c0_i32_1 : i32, i32, i32
  }
  func.func @transform_5(%arg0: i32) -> (i32, i32, i32) {
    %c0_i32 = arith.constant 0 : i32
    %c0_i32_0 = arith.constant 0 : i32
    %c0_i32_1 = arith.constant 0 : i32
    %c0_i32_2 = arith.constant 0 : i32
    return %c0_i32, %c0_i32_0, %c0_i32_1 : i32, i32, i32
  }
  func.func @transform_6(%arg0: i32) -> (i32, i32, i32) {
    %c0_i32 = arith.constant 0 : i32
    %c0_i32_0 = arith.constant 0 : i32
    %c0_i32_1 = arith.constant 0 : i32
    %c0_i32_2 = arith.constant 0 : i32
    return %c0_i32, %c0_i32_0, %c0_i32_1 : i32, i32, i32
  }
  func.func @transform_7(%arg0: i32) -> (i32, i32) {
    %c0_i32 = arith.constant 0 : i32
    %c0_i32_0 = arith.constant 0 : i32
    %c0_i32_1 = arith.constant 0 : i32
    return %c0_i32, %c0_i32_0 : i32, i32
  }
  func.func @transform_8(%arg0: i32) -> (i32, i32) {
    %c0_i32 = arith.constant 0 : i32
    %c0_i32_0 = arith.constant 0 : i32
    %c0_i32_1 = arith.constant 0 : i32
    return %c0_i32, %c0_i32_0 : i32, i32
  }
  func.func @transform_9(%arg0: i32) -> (i32, i32) {
    %c0_i32 = arith.constant 0 : i32
    %c0_i32_0 = arith.constant 0 : i32
    %c0_i32_1 = arith.constant 0 : i32
    return %c0_i32, %c0_i32_0 : i32, i32
  }
  func.func @transform_10(%arg0: i32) -> (i32, i32) {
    %c0_i32 = arith.constant 0 : i32
    %c0_i32_0 = arith.constant 0 : i32
    return %arg0, %c0_i32 : i32, i32
  }
}

</mosaic_0001>

<bundles_post_ra>
// kernel: tpu_custom_call.1
= control target key start
LH: loop header
LB: loop body
LE: loop exit
PB: predicated region body
PF: predicated region fallthrough
CT: control target
= control target key end

     0   :  { %s3799_s0 = inlined_call_operand.vmem [shape: f32[5], index: 0, kind: input, shape index: {}]   ;;  %s3800_s1 = inlined_call_operand.hbm [shape: bf16[3,256,128], index: 1, kind: input, shape index: {}]   ;;  %s3801_s2 = inlined_call_operand.vmem [shape: bf16[3,128,64], index: 2, kind: input, shape index: {}]   ;;  %s3802_s3 = inlined_call_operand.vmem [shape: f32[3,1,64], index: 3, kind: input, shape index: {}]   ;;  %s3803_s4 = inlined_call_operand.vmem [shape: bf16[3,64,64], index: 4, kind: input, shape index: {}]   ;;  %s3804_s5 = inlined_call_operand.vmem [shape: f32[3,1,64], index: 5, kind: input, shape index: {}]   ;;  %s3805_s6 = inlined_call_operand.vmem [shape: bf16[3,64,64], index: 6, kind: input, shape index: {}]   ;;  %s3806_s7 = inlined_call_operand.vmem [shape: f32[1,64], index: 7, kind: input, shape index: {}]   ;;  %s3807_s8 = inlined_call_operand.vmem [shape: bf16[64,128], index: 8, kind: input, shape index: {}]   ;;  %s3808_s9 = inlined_call_operand.vmem [shape: f32[1,128], index: 9, kind: input, shape index: {}]   ;;  %s3809_s10 = inlined_call_operand.hbm [shape: f32[256,128], index: 10, kind: output, shape index: {}]  }
   0x1   :  { %3814 = sst [smem:[#allocation18_spill]] %s3799_s0 }
   0x2   :  { %15 = vsyncpa [#allocation5], 0 }
   0x3   :  { %16 = vsyncpa [#allocation3], 0 }
   0x4   :  { %18 = vsyncpa [#allocation3 + $0x1], 0 }
   0x5   :  { %19 = vsyncpa [#allocation4], 0 }
   0x6   :  { %21 = vsyncpa [#allocation4 + $0x1], 0  ;;  %s3078_s13 = smov 0   ;;  %s3080_s14 = smov 0  }
   0x7   :  { %s3082_s15 = smov 0   ;;  %s3084_s16 = smov 0  }
   0x8 LB: > { %3815 = sst [smem:[#allocation14_spill]] %s3008_s15  ;;  %s3099_s17 = sadd.s32 4294967295, %s3012_s16   ;;  %s3012_s16 = sphi %s3084_s16, %s3826_s16   ;;  %s3008_s15 = sphi %s3082_s15, %s3828_s15   ;;  %s3004_s14 = sphi %s3080_s14, %s3830_s14   ;;  %s3000_s13 = sphi %s3078_s13, %s3829_s13  }
   0x9   : > { %3816 = sst [smem:[#allocation15_spill]] %s3012_s16  ;;  %s2284_s18 = sadd.s32 4294967294, %s3012_s16  }
   0xa   : > { %s3103_s19 = sadd.s32 1, %s3012_s16   ;;  %s55_s20 = sadd.s32 1, %s3008_s15 }
   0xb   : > { %3817 = sst [smem:[#allocation16_spill]] %s3103_s19  ;;  %s52_s21 = ssub.s32 %s3012_s16, %s3103_s19 }
   0xc   : > { %p62_p0 = scmp.ne.s32.totalorder %s3008_s15, %s3004_s14  ;;  %p53_p1 = scmp.eq.s32.totalorder %s52_s21, 0 }
   0xd   : > { %p63_p2 = scmp.eq.s32.totalorder %s3012_s16, 0  ;;  %p68_p3 = scmp.ne.s32.totalorder %s3004_s14, %s3000_s13 }
   0xe   : > { %p69_p4 = scmp.eq.s32.totalorder %s3099_s17, 0  ;;  %p260_p7 = scmp.eq.s32.totalorder %s3099_s17, 1 }
   0xf   : > { %s3115_s22 = scalar_select %p53_p1, %s3008_s15, %s55_s20  }
  0x10   : > { %p3117_p5 = por %p63_p2, %p62_p0  ;;  %p3123_p6 = por %p69_p4, %p68_p3 }
  0x11   : > { %3818 = sst [smem:[#allocation17_spill]] %s3115_s22  ;;  %p266_p8 = scmp.eq.s32.totalorder %s2284_s18, 1 }
  0x12   : > { %p2285_p9 = scmp.ge.s32.totalorder %s3012_s16, 1  ;;  %p273_p10 = scmp.lt.s32.totalorder %s3012_s16, 3 }
  0x13   : > { %p3130_p11 = por %p260_p7, %p62_p0  ;;  %p3134_p12 = por %p266_p8, %p68_p3 }
  0x14   : > { %p3138_p13 = pnand %p2285_p9, %p273_p10  ;;  %s3824_s0 = sld [smem:[#allocation18_spill]] }
  0x15   : > { %s3014_s11 = smov [#allocation2]   ;;  %p2287_p2 = scmp.ge.s32.totalorder %s3012_s16, 2 }
  0x16   : > { %p2867_p1 = pneg %p3138_p13 }
  0x17   : > { %316 = sbr.rel (%p2287_p2) target bundleno = 42 (0x2a), region = 52 }
  0x18   : > { %p2868_p0 = pnand %p2867_p1, %p69_p4 }
  0x1a   : > { %s285_s30 = sshll.u32 %s3824_s0, 4  ;;  %s286_s30 = int_to_ptr.vmem [resolvable:$true] %s285_s30 }
  0x1b   : > { %2870 = dma.vmem_to_smem (!%p2868_p0), %s286_s30, 16, %s3014_s11, [#allocation5]  }
  0x1c   : > { %s320_s12 = sand.u32 1, %s3008_s15   ;;  %s2764_s18 = sshll.u32 %s3012_s16, 6 }
  0x1d   : > { %s2850_s20 = smul.u32 192, %s320_s12  ;;  %s329_s29 = scalar_lea.hbm %s3800_s1, %s2764_s18 }
  0x1e   : > { %s342_s30 = sshll.u32 %s329_s29, 4  ;;  %s3015_s15 = smov 2048   ;;  %s343_s30 = int_to_ptr.hbm [resolvable:$true] %s342_s30 }
  0x1f   : > { %s2854_s11 = scalar_select %p3117_p5, [#allocation0], [#allocation10] }
  0x20   : > { %s324_s0 = scalar_lea.vmem [#allocation6], %s2850_s20  ;;  %2855 = sst [smem:[#allocation9]] (%p3117_p5), %s3015_s15 }
  0x21   : > { %s344_s22 = sshll.u32 %s324_s0, 4  ;;  %s334_s19 = sld [smem:[%s2854_s11]]   ;;  %s345_s22 = int_to_ptr.vmem [resolvable:$true] %s344_s22 }
  0x22   : > { %s3016_s16 = smov 1024   ;;  %s3017_s21 = smov 16  }
  0x23   : > { %2856 = sst [smem:[#allocation9 + $0x1]] (%p3117_p5), %s3016_s16  ;;  %s3018_s18 = smov 64  }
  0x24   : > { %2857 = sst [smem:[#allocation9 + $0x2]] (%p3117_p5), %s3017_s21  ;;  %s3019_s20 = smov 4  }
  0x25   : > { %2858 = sst [smem:[#allocation9 + $0x3]] (%p3117_p5), %s3018_s18  ;;  %s321_s29 = scalar_lea.sflag [#allocation3], %s320_s12 }
  0x26   : > { %2859 = sst [smem:[#allocation9 + $0x4]] (%p3117_p5), %s3018_s18  ;;  %s3020_s11 = smov [#allocation8]  }
  0x27   : > { %s2290_s28 = sshll.u32 %s334_s19, 26  ;;  %2860 = sst [smem:[#allocation9 + $0x5]] (%p3117_p5), %s3019_s20 }
  0x28   : > { %s2291_s0 = sadd.s32 134217728, %s2290_s28 }
  0x29   : > { %2861 = dma.general (%p3117_p5), %s343_s30, 3072, %s345_s22, %s321_s29, %s3020_s11, [#allocation9], %s2291_s0, 0  }
  0x2a PF: > { %369 = sbr.rel (%p3138_p13) target bundleno = 966 (0x3c6), region = 60 }
  0x2f   : > { %2987 = dma.done.wait (%p69_p4), [#allocation5], 16  }
  0x30   : > { %2989 = vsyncadd (%p69_p4), [#allocation5], 4294967280  ;;  %s3180_s15 = sand.u32 1, %s3004_s14  }
  0x31   : > { %s2851_s16 = smul.u32 192, %s3180_s15  ;;  %s377_s19 = scalar_lea.sflag [#allocation3], %s3180_s15 }
  0x33   : > { %s3184_s23 = scalar_lea.vmem [#allocation6], %s2851_s16 }
  0x34   : > { %2991 = dma.done.wait (%p3123_p6), %s377_s19, 3072  }
  0x35   : > { %2993 = vsyncadd (%p3123_p6), %s377_s19, 4294964224 }
  0x36   : > { %386 = sfence }
  0x37   : > { %v2780_v0 = vld [vmem:[%s3801_s2 + $0x38] sm:$0xff]  ;;  %v2779_v2 = vld [vmem:[%s3801_s2 + $0x30] sm:$0xff]  ;;  %v2778_v4 = vld [vmem:[%s3801_s2 + $0x28] sm:$0xff]  ;;  %s605_s16 = sld [smem:[#allocation2]]  ;;  %vm699_vm2 = vcmask 523264   ;;  %s2294_s0 = sshll.u32 %s3180_s15, 7 }
  0x38   : > { %v2804_v1 = vld [vmem:[%s3801_s2 + $0x78] sm:$0xff]  ;;  %556 = vmatpush.bf16.msra.mxu0 %v2780_v0  ;;  %v2803_v3 = vld [vmem:[%s3801_s2 + $0x70] sm:$0xff]  ;;  %v2802_v5 = vld [vmem:[%s3801_s2 + $0x68] sm:$0xff]  ;;  %s2482_s27 = sld [smem:[#allocation2 + $0x1]]  ;;  %s2841_s19 = sshll.u32 %s3099_s17, 7 }
  0x39   : > { %973 = vmatpush.bf16.msra.mxu2 %v2804_v1  ;;  %v2784_v6 = vld [vmem:[%s3803_s4 + $0x18] sm:$0xff]  ;;  %v2777_v7 = vld [vmem:[%s3801_s2 + $0x20] sm:$0xff]  ;;  %v2775_v11 = vld [vmem:[%s3801_s2 + $0x10] sm:$0xff]  ;;  %s2296_s21 = sld [smem:[#allocation2 + $0x4]]  ;;  %s2962_s24 = scalar_lea.hbm %s3809_s10, 256 }
  0x3a   : > { %2842 = vmatpush.bf16.msra.mxu1 %v2784_v6  ;;  %v2801_v8 = vld [vmem:[%s3801_s2 + $0x60] sm:$0xff]  ;;  %v2776_v9 = vld [vmem:[%s3801_s2 + $0x18] sm:$0xff]  ;;  %v2799_v12 = vld [vmem:[%s3801_s2 + $0x50] sm:$0xff]  ;;  %s2295_s28 = sld [smem:[#allocation2 + $0x3]] }
  0x3b   : > { %v2800_v10 = vld [vmem:[%s3801_s2 + $0x58] sm:$0xff]  ;;  %v2774_v13 = vld [vmem:[%s3801_s2 + $0x8] sm:$0xff]  ;;  %v2773_v15 = vld [vmem:[%s3801_s2] sm:$0xff] }
  0x3c   : > { %557 = vmatpush.bf16.msra.mxu0 %v2779_v2  ;;  %v2798_v14 = vld [vmem:[%s3801_s2 + $0x48] sm:$0xff]  ;;  %v2797_v16 = vld [vmem:[%s3801_s2 + $0x40] sm:$0xff]  ;;  %v2783_v19 = vld [vmem:[%s3803_s4 + $0x10] sm:$0xff] }
  0x3d   : > { %974 = vmatpush.bf16.msra.mxu2 %v2803_v3  ;;  %v2765_v17 = vld [vmem:[%s3184_s23] sm:$0xff]  ;;  %v2766_v20 = vld [vmem:[%s3184_s23 + $0x8] sm:$0xff]  ;;  %v2767_v22 = vld [vmem:[%s3184_s23 + $0x10] sm:$0xff]  ;;  %v3301_v48 = vstv %s605_s16  ;;  %s3747_s16 = scalar_lea.vmem [#allocation7], %s2294_s0 }
  0x3e   : > { %v2789_v18 = vld [vmem:[%s3184_s23 + $0x40] sm:$0xff]  ;;  %2843 = vmatpush.bf16.msra.mxu1 %v2783_v19  ;;  %v2790_v21 = vld [vmem:[%s3184_s23 + $0x48] sm:$0xff]  ;;  %v2791_v23 = vld [vmem:[%s3184_s23 + $0x50] sm:$0xff]  ;;  %v3306_v54 = vstv %s2482_s27  ;;  %s2195_s27 = scalar_lea.hbm %s3809_s10, %s2841_s19  ;;  %s2196_s12 = sshll.u32 %s3747_s16, 4  ;;  %s2197_s12 = int_to_ptr.vmem [resolvable:$true] %s2196_s12 }
  0x3f   : > { %v2808_v24 = vld [vmem:[%s3803_s4 + $0x38] sm:$0xff]  ;;  %v2782_v25 = vld [vmem:[%s3803_s4 + $0x8] sm:$0xff]  ;;  %v2769_v28 = vld [vmem:[%s3184_s23 + $0x20] sm:$0xff]  ;;  %s2198_s30 = sshll.u32 %s2195_s27, 4  ;;  %s2199_s30 = int_to_ptr.hbm [resolvable:$true] %s2198_s30 }
  0x40   : > { %558 = vmatpush.bf16.msra.mxu0 %v2778_v4  ;;  %2846 = vmatpush.bf16.msra.mxu3 %v2808_v24  ;;  %v2768_v26 = vld [vmem:[%s3184_s23 + $0x18] sm:$0xff]  ;;  %v2793_v29 = vld [vmem:[%s3184_s23 + $0x60] sm:$0xff]  ;;  %v2807_v30 = vld [vmem:[%s3803_s4 + $0x30] sm:$0xff]  ;;  %s2956_s18 = sshra.s32 %s2199_s30, 4  ;;  %s2957_s18 = int_to_ptr.hbm [resolvable:$true] %s2956_s18 }
  0x41   : > { %975 = vmatpush.bf16.msra.mxu2 %v2802_v5  ;;  %v2792_v27 = vld [vmem:[%s3184_s23 + $0x58] sm:$0xff]  ;;  %v2781_v31 = vld [vmem:[%s3803_s4] sm:$0xff]  ;;  %v2770_v32 = vld [vmem:[%s3184_s23 + $0x28] sm:$0xff]  ;;  %p2963_p6 = scmp.lt.s32.totalorder %s2957_s18, %s3809_s10 }
  0x42   : > { %2844 = vmatpush.bf16.msra.mxu1 %v2782_v25  ;;  %v2794_v33 = vld [vmem:[%s3184_s23 + $0x68] sm:$0xff]  ;;  %v2771_v34 = vld [vmem:[%s3184_s23 + $0x30] sm:$0xff]  ;;  %v2772_v37 = vld [vmem:[%s3184_s23 + $0x38] sm:$0xff] }
  0x43   : > { %v2795_v35 = vld [vmem:[%s3184_s23 + $0x70] sm:$0xff]  ;;  %v2806_v36 = vld [vmem:[%s3803_s4 + $0x28] sm:$0xff]  ;;  %v2796_v38 = vld [vmem:[%s3184_s23 + $0x78] sm:$0xff] }
  0x44   : > { %559 = vmatpush.bf16.msra.mxu0 %v2777_v7  ;;  %2847 = vmatpush.bf16.msra.mxu3 %v2807_v30  ;;  %v2805_v39 = vld [vmem:[%s3803_s4 + $0x20] sm:$0xff]  ;;  %v2828_v40 = vld [vmem:[%s3801_s2 + $0xb8] sm:$0xff]  ;;  %v2827_v41 = vld [vmem:[%s3801_s2 + $0xb0] sm:$0xff] }
  0x45   : > { %976 = vmatpush.bf16.msra.mxu2 %v2801_v8  ;;  %v2826_v42 = vld [vmem:[%s3801_s2 + $0xa8] sm:$0xff]  ;;  %v3290_v44 = vld [vmem:[%s3802_s3] ss:$0 sm:$0xff]  ;;  %v3299_v47 = vld [vmem:[%s3802_s3 + $0x1] ss:$0 sm:$0xff] }
  0x46   : > { %2845 = vmatpush.bf16.msra.mxu1 %v2781_v31  ;;  %v2825_v45 = vld [vmem:[%s3801_s2 + $0xa0] sm:$0xff]  ;;  %v2824_v56 = vld [vmem:[%s3801_s2 + $0x98] sm:$0xff]  ;;  %v2823_v2 = vld [vmem:[%s3801_s2 + $0x90] sm:$0xff] }
  0x47   : > { %v2822_v4 = vld [vmem:[%s3801_s2 + $0x88] sm:$0xff] }
  0x48   : > { %560 = vmatpush.bf16.msra.mxu0 %v2776_v9  ;;  %2848 = vmatpush.bf16.msra.mxu3 %v2806_v36 }
  0x49   : > { %977 = vmatpush.bf16.msra.mxu2 %v2800_v10 }
  0x4c   : > { %561 = vmatpush.bf16.msra.mxu0 %v2775_v11  ;;  %2849 = vmatpush.bf16.msra.mxu3 %v2805_v39 }
  0x4d   : > { %978 = vmatpush.bf16.msra.mxu2 %v2799_v12 }
  0x50   : > { %562 = vmatpush.bf16.msra.mxu0 %v2774_v13  ;;  %v2821_v13 = vld [vmem:[%s3801_s2 + $0x80] sm:$0xff] }
  0x51   : > { %979 = vmatpush.bf16.msra.mxu2 %v2798_v14 }
  0x54   : > { %563 = vmatpush.bf16.msra.mxu0 %v2773_v15 }
  0x55   : > { %980 = vmatpush.bf16.msra.mxu2 %v2797_v16 }
  0x57   : > { %564 = vmatmul.bf16.vlgmr.msra.gmra.mxu0 %v2765_v17 }
  0x58   : > { %728 = vmatpush.bf16.msrb.mxu0 %v2784_v6  ;;  %981 = vmatmul.bf16.vlgmr.msra.gmra.mxu2 %v2789_v18 }
  0x59   : > { %1146 = vmatpush.bf16.msrb.mxu2 %v2808_v24 }
  0x5c   : > { %729 = vmatpush.bf16.msrb.mxu0 %v2783_v19 }
  0x5d   : > { %1147 = vmatpush.bf16.msrb.mxu2 %v2807_v30 }
  0x60   : > { %730 = vmatpush.bf16.msrb.mxu0 %v2782_v25 }
  0x61   : > { %1148 = vmatpush.bf16.msrb.mxu2 %v2806_v36 }
  0x64   : > { %731 = vmatpush.bf16.msrb.mxu0 %v2781_v31 }
  0x65   : > { %1149 = vmatpush.bf16.msrb.mxu2 %v2805_v39 }
  0x67   : > { %569 = vmatmul.bf16.gmra.mxu0 %v2766_v20 }
  0x68   : > { %986 = vmatmul.bf16.gmra.mxu2 %v2790_v21  ;;  %1585 = vmatpush.bf16.msra.mxu0 %v2828_v40 }
  0x6c   : > { %1586 = vmatpush.bf16.msra.mxu0 %v2827_v41 }
  0x70   : > { %1587 = vmatpush.bf16.msra.mxu0 %v2826_v42 }
  0x74   : > { %1588 = vmatpush.bf16.msra.mxu0 %v2825_v45 }
  0x77   : > { %574 = vmatmul.bf16.gmra.mxu0 %v2767_v22 }
  0x78   : > { %991 = vmatmul.bf16.gmra.mxu2 %v2791_v23  ;;  %1589 = vmatpush.bf16.msra.mxu0 %v2824_v56 }
  0x7c   : > { %1590 = vmatpush.bf16.msra.mxu0 %v2823_v2 }
  0x80   : > { %1591 = vmatpush.bf16.msra.mxu0 %v2822_v4 }
  0x84   : > { %1592 = vmatpush.bf16.msra.mxu0 %v2821_v13 }
  0x87   : > { %579 = vmatmul.bf16.gmra.mxu0 %v2768_v26 }
  0x88   : > { %996 = vmatmul.bf16.gmra.mxu2 %v2792_v27 }
  0x97   : > { %584 = vmatmul.bf16.gmra.mxu0 %v2769_v28 }
  0x98   : > { %1001 = vmatmul.bf16.gmra.mxu2 %v2793_v29 }
  0xa7   : > { %589 = vmatmul.bf16.gmra.mxu0 %v2770_v32 }
  0xa8   : > { %1006 = vmatmul.bf16.gmra.mxu2 %v2794_v33 }
  0xb7   : > { %594 = vmatmul.bf16.gmra.mxu0 %v2771_v34 }
  0xb8   : > { %1011 = vmatmul.bf16.gmra.mxu2 %v2795_v35 }
  0xc7   : > { %599 = vmatmul.bf16.gmra.mxu0 %v2772_v37 }
  0xc8   : > { %1016 = vmatmul.bf16.gmra.mxu2 %v2796_v38 }
  0xd4   : > { %v565_v43 = vpop.f32.mrf.mxu0 }
  0xd5   : > { %v566_v46 = vadd.f32 %v3290_v44, %v565_v43 }
  0xd7   : > { %v623_v51 = vmul.f32 %v3301_v48, %v566_v46  ;;  %vm606_vm0 = vcmp.ge.f32.partialorder %v566_v46, 0.0 }
  0xd9   : > { %v639_v57 = vsel %vm606_vm0, %v566_v46, %v623_v51 }
  0xdb   : > { %v982_v49 = vpop.f32.mrf.mxu2 }
  0xdc   : > { %v567_v50 = vpop.f32.mrf.mxu0  ;;  %v983_v52 = vadd.f32 %v3299_v47, %v982_v49 }
  0xdd   : > { %v568_v53 = vadd.f32 %v3290_v44, %v567_v50 }
  0xde   : > { %v1040_v58 = vmul.f32 %v3306_v54, %v983_v52  ;;  %vm1023_vm3 = vcmp.ge.f32.partialorder %v983_v52, 0.0 }
  0xdf   : > { %vm607_vm1 = vcmp.ge.f32.partialorder %v568_v53, 0.0  ;;  %v624_v55 = vmul.f32 %v3301_v48, %v568_v53 }
  0xe0   : > { %v1056_v0 = vsel %vm1023_vm3, %v983_v52, %v1040_v58 }
  0xe1   : > { %v640_v59 = vsel %vm607_vm1, %v568_v53, %v624_v55  ;;  %v2813_v55 = vld [vmem:[%s3184_s23 + $0x80] sm:$0xff] }
  0xe2   : > { %v655_v60 = vpack.c.bf16 %v640_v59, %v639_v57 }
  0xe3   : > { %v984_v61 = vpop.f32.mrf.mxu2 }
  0xe4   : > { %v985_v62 = vadd.f32 %v3299_v47, %v984_v61  ;;  %v570_v63 = vpop.f32.mrf.mxu0  ;;  %2377 = vmatmul.msk.bf16.vlgmr.msrb.gmra.mxu0 %vm699_vm2, %v655_v60 }
  0xe5   : > { %v571_v6 = vadd.f32 %v3290_v44, %v570_v63 }
  0xe6   : > { %vm1024_vm4 = vcmp.ge.f32.partialorder %v985_v62, 0.0  ;;  %v1041_v1 = vmul.f32 %v3306_v54, %v985_v62 }
  0xe7   : > { %v625_v9 = vmul.f32 %v3301_v48, %v571_v6  ;;  %vm608_vm5 = vcmp.ge.f32.partialorder %v571_v6, 0.0 }
  0xe8   : > { %v1057_v3 = vsel %vm1024_vm4, %v985_v62, %v1041_v1 }
  0xe9   : > { %v1072_v5 = vpack.c.bf16 %v1057_v3, %v1056_v0  ;;  %v641_v15 = vsel %vm608_vm5, %v571_v6, %v625_v9 }
  0xeb   : > { %v987_v7 = vpop.f32.mrf.mxu2  ;;  %2508 = vmatmul.msk.bf16.vlgmr.msrb.gmra.mxu2 %vm699_vm2, %v1072_v5 }
  0xec   : > { %v572_v8 = vpop.f32.mrf.mxu0  ;;  %v988_v10 = vadd.f32 %v3299_v47, %v987_v7 }
  0xed   : > { %v573_v11 = vadd.f32 %v3290_v44, %v572_v8 }
  0xee   : > { %v1042_v14 = vmul.f32 %v3306_v54, %v988_v10  ;;  %vm1025_vm7 = vcmp.ge.f32.partialorder %v988_v10, 0.0 }
  0xef   : > { %vm609_vm6 = vcmp.ge.f32.partialorder %v573_v11, 0.0  ;;  %v626_v12 = vmul.f32 %v3301_v48, %v573_v11 }
  0xf0   : > { %v1058_v22 = vsel %vm1025_vm7, %v988_v10, %v1042_v14  ;;  %v2814_v10 = vld [vmem:[%s3184_s23 + $0x88] sm:$0xff] }
  0xf1   : > { %v642_v16 = vsel %vm609_vm6, %v573_v11, %v626_v12 }
  0xf2   : > { %v656_v18 = vpack.c.bf16 %v642_v16, %v641_v15 }
  0xf3   : > { %v989_v17 = vpop.f32.mrf.mxu2 }
  0xf4   : > { %v990_v19 = vadd.f32 %v3299_v47, %v989_v17  ;;  %v575_v20 = vpop.f32.mrf.mxu0  ;;  %2378 = vmatmul.msk.bf16.gmra.mxu0 %vm699_vm2, %v656_v18 }
  0xf5   : > { %v576_v25 = vadd.f32 %v3290_v44, %v575_v20 }
  0xf6   : > { %vm1026_vm8 = vcmp.ge.f32.partialorder %v990_v19, 0.0  ;;  %v1043_v21 = vmul.f32 %v3306_v54, %v990_v19 }
  0xf7   : > { %v627_v28 = vmul.f32 %v3301_v48, %v576_v25  ;;  %vm610_vm9 = vcmp.ge.f32.partialorder %v576_v25, 0.0 }
  0xf8   : > { %v1059_v23 = vsel %vm1026_vm8, %v990_v19, %v1043_v21 }
  0xf9   : > { %v1073_v24 = vpack.c.bf16 %v1059_v23, %v1058_v22  ;;  %v643_v33 = vsel %vm610_vm9, %v576_v25, %v627_v28 }
  0xfb   : > { %v992_v26 = vpop.f32.mrf.mxu2  ;;  %2509 = vmatmul.msk.bf16.gmra.mxu2 %vm699_vm2, %v1073_v24 }
  0xfc   : > { %v577_v27 = vpop.f32.mrf.mxu0  ;;  %v993_v29 = vadd.f32 %v3299_v47, %v992_v26 }
  0xfd   : > { %v578_v30 = vadd.f32 %v3290_v44, %v577_v27 }
  0xfe   : > { %v1044_v32 = vmul.f32 %v3306_v54, %v993_v29  ;;  %vm1027_vm11 = vcmp.ge.f32.partialorder %v993_v29, 0.0 }
  0xff   : > { %vm611_vm10 = vcmp.ge.f32.partialorder %v578_v30, 0.0  ;;  %v628_v31 = vmul.f32 %v3301_v48, %v578_v30 }
 0x100   : > { %v1060_v40 = vsel %vm1027_vm11, %v993_v29, %v1044_v32  ;;  %v2815_v29 = vld [vmem:[%s3184_s23 + $0x90] sm:$0xff] }
 0x101   : > { %v644_v34 = vsel %vm611_vm10, %v578_v30, %v628_v31 }
 0x102   : > { %v657_v36 = vpack.c.bf16 %v644_v34, %v643_v33 }
 0x103   : > { %v994_v35 = vpop.f32.mrf.mxu2 }
 0x104   : > { %v995_v37 = vadd.f32 %v3299_v47, %v994_v35  ;;  %v580_v38 = vpop.f32.mrf.mxu0  ;;  %2379 = vmatmul.msk.bf16.gmra.mxu0 %vm699_vm2, %v657_v36 }
 0x105   : > { %v581_v41 = vadd.f32 %v3290_v44, %v580_v38 }
 0x106   : > { %vm1028_vm12 = vcmp.ge.f32.partialorder %v995_v37, 0.0  ;;  %v1045_v39 = vmul.f32 %v3306_v54, %v995_v37 }
 0x107   : > { %v629_v46 = vmul.f32 %v3301_v48, %v581_v41  ;;  %vm612_vm13 = vcmp.ge.f32.partialorder %v581_v41, 0.0 }
 0x108   : > { %v1061_v42 = vsel %vm1028_vm12, %v995_v37, %v1045_v39 }
 0x109   : > { %v1074_v43 = vpack.c.bf16 %v1061_v42, %v1060_v40  ;;  %v645_v53 = vsel %vm612_vm13, %v581_v41, %v629_v46 }
 0x10b   : > { %v997_v45 = vpop.f32.mrf.mxu2  ;;  %2510 = vmatmul.msk.bf16.gmra.mxu2 %vm699_vm2, %v1074_v43 }
 0x10c   : > { %v582_v49 = vpop.f32.mrf.mxu0  ;;  %v998_v50 = vadd.f32 %v3299_v47, %v997_v45 }
 0x10d   : > { %v583_v51 = vadd.f32 %v3290_v44, %v582_v49 }
 0x10e   : > { %v1046_v56 = vmul.f32 %v3306_v54, %v998_v50  ;;  %vm1029_vm15 = vcmp.ge.f32.partialorder %v998_v50, 0.0 }
 0x10f   : > { %vm613_vm14 = vcmp.ge.f32.partialorder %v583_v51, 0.0  ;;  %v630_v52 = vmul.f32 %v3301_v48, %v583_v51 }
 0x110   : > { %v1062_v63 = vsel %vm1029_vm15, %v998_v50, %v1046_v56 }
 0x111   : > { %v646_v57 = vsel %vm613_vm14, %v583_v51, %v630_v52  ;;  %v2816_v51 = vld [vmem:[%s3184_s23 + $0x98] sm:$0xff] }
 0x112   : > { %v658_v59 = vpack.c.bf16 %v646_v57, %v645_v53  ;;  %v2788_v52 = vld [vmem:[%s3805_s6 + $0x18] sm:$0xff] }
 0x113   : > { %v999_v58 = vpop.f32.mrf.mxu2  ;;  %1405 = vmatpush.bf16.msrb.mxu3 %v2788_v52 }
 0x114   : > { %v1000_v60 = vadd.f32 %v3299_v47, %v999_v58  ;;  %v585_v61 = vpop.f32.mrf.mxu0  ;;  %2380 = vmatmul.msk.bf16.vlgmr.msra.gmra.mxu1 %vm699_vm2, %v658_v59  ;;  %1593 = vmatmul.bf16.vlgmr.msra.gmra.mxu0 %v2813_v55 }
 0x115   : > { %v586_v0 = vadd.f32 %v3290_v44, %v585_v61 }
 0x116   : > { %vm1030_vm0 = vcmp.ge.f32.partialorder %v1000_v60, 0.0  ;;  %v1047_v62 = vmul.f32 %v3306_v54, %v1000_v60 }
 0x117   : > { %v631_v4 = vmul.f32 %v3301_v48, %v586_v0  ;;  %vm614_vm1 = vcmp.ge.f32.partialorder %v586_v0, 0.0 }
 0x118   : > { %v1063_v1 = vsel %vm1030_vm0, %v1000_v60, %v1047_v62  ;;  %v2787_v60 = vld [vmem:[%s3805_s6 + $0x10] sm:$0xff] }
 0x119   : > { %v1075_v2 = vpack.c.bf16 %v1063_v1, %v1062_v63  ;;  %v647_v9 = vsel %vm614_vm1, %v586_v0, %v631_v4  ;;  %v2812_v63 = vld [vmem:[%s3805_s6 + $0x38] sm:$0xff]  ;;  %1406 = vmatpush.bf16.msrb.mxu3 %v2787_v60 }
 0x11a   : > { %1308 = vmatpush.bf16.msrb.mxu1 %v2812_v63  ;;  %v2820_v63 = vld [vmem:[%s3184_s23 + $0xb8] sm:$0xff] }
 0x11b   : > { %v1002_v3 = vpop.f32.mrf.mxu2  ;;  %2511 = vmatmul.msk.bf16.vlgmr.msra.gmra.mxu3 %vm699_vm2, %v1075_v2 }
 0x11c   : > { %v587_v5 = vpop.f32.mrf.mxu0  ;;  %v1003_v6 = vadd.f32 %v3299_v47, %v1002_v3  ;;  %v2786_v3 = vld [vmem:[%s3805_s6 + $0x8] sm:$0xff] }
 0x11d   : > { %v588_v7 = vadd.f32 %v3290_v44, %v587_v5  ;;  %1407 = vmatpush.bf16.msrb.mxu3 %v2786_v3 }
 0x11e   : > { %v1048_v11 = vmul.f32 %v3306_v54, %v1003_v6  ;;  %vm1031_vm4 = vcmp.ge.f32.partialorder %v1003_v6, 0.0 }
 0x11f   : > { %vm615_vm3 = vcmp.ge.f32.partialorder %v588_v7, 0.0  ;;  %v632_v8 = vmul.f32 %v3301_v48, %v588_v7 }
 0x120   : > { %v1064_v18 = vsel %vm1031_vm4, %v1003_v6, %v1048_v11 }
 0x121   : > { %v648_v12 = vsel %vm615_vm3, %v588_v7, %v632_v8  ;;  %v2785_v7 = vld [vmem:[%s3805_s6] sm:$0xff] }
 0x122   : > { %v659_v14 = vpack.c.bf16 %v648_v12, %v647_v9  ;;  %1408 = vmatpush.bf16.msrb.mxu3 %v2785_v7  ;;  %v2817_v12 = vld [vmem:[%s3184_s23 + $0xa0] sm:$0xff] }
 0x123   : > { %v1004_v13 = vpop.f32.mrf.mxu2 }
 0x124   : > { %v1005_v15 = vadd.f32 %v3299_v47, %v1004_v13  ;;  %v590_v16 = vpop.f32.mrf.mxu0  ;;  %2381 = vmatmul.msk.bf16.gmra.mxu1 %vm699_vm2, %v659_v14  ;;  %1598 = vmatmul.bf16.gmra.mxu0 %v2814_v10  ;;  %v2811_v13 = vld [vmem:[%s3805_s6 + $0x30] sm:$0xff] }
 0x125   : > { %v591_v19 = vadd.f32 %v3290_v44, %v590_v16  ;;  %1309 = vmatpush.bf16.msrb.mxu1 %v2811_v13 }
 0x126   : > { %vm1032_vm5 = vcmp.ge.f32.partialorder %v1005_v15, 0.0  ;;  %v1049_v17 = vmul.f32 %v3306_v54, %v1005_v15 }
 0x127   : > { %v633_v23 = vmul.f32 %v3301_v48, %v591_v19  ;;  %vm616_vm6 = vcmp.ge.f32.partialorder %v591_v19, 0.0 }
 0x128   : > { %v1065_v20 = vsel %vm1032_vm5, %v1005_v15, %v1049_v17 }
 0x129   : > { %v1076_v21 = vpack.c.bf16 %v1065_v20, %v1064_v18  ;;  %v649_v28 = vsel %vm616_vm6, %v591_v19, %v633_v23  ;;  %v2818_v23 = vld [vmem:[%s3184_s23 + $0xa8] sm:$0xff] }
 0x12b   : > { %v1007_v22 = vpop.f32.mrf.mxu2  ;;  %2512 = vmatmul.msk.bf16.gmra.mxu3 %vm699_vm2, %v1076_v21 }
 0x12c   : > { %v592_v24 = vpop.f32.mrf.mxu0  ;;  %v1008_v25 = vadd.f32 %v3299_v47, %v1007_v22  ;;  %v2809_v22 = vld [vmem:[%s3805_s6 + $0x20] sm:$0xff] }
 0x12d   : > { %v593_v26 = vadd.f32 %v3290_v44, %v592_v24  ;;  %v2831_v24 = vld [vmem:[%s3803_s4 + $0x50] sm:$0xff] }
 0x12e   : > { %v1050_v30 = vmul.f32 %v3306_v54, %v1008_v25  ;;  %vm1033_vm8 = vcmp.ge.f32.partialorder %v1008_v25, 0.0 }
 0x12f   : > { %vm617_vm7 = vcmp.ge.f32.partialorder %v593_v26, 0.0  ;;  %v634_v27 = vmul.f32 %v3301_v48, %v593_v26 }
 0x130   : > { %v1066_v37 = vsel %vm1033_vm8, %v1008_v25, %v1050_v30 }
 0x131   : > { %v650_v31 = vsel %vm617_vm7, %v593_v26, %v634_v27  ;;  %v3438_v27 = vstv %s2296_s21  ;;  %s2184_s21 = scalar_lea.sflag [#allocation4], %s3180_s15 }
 0x132   : > { %v660_v33 = vpack.c.bf16 %v650_v31, %v649_v28 }
 0x133   : > { %v1009_v32 = vpop.f32.mrf.mxu2 }
 0x134   : > { %v1010_v34 = vadd.f32 %v3299_v47, %v1009_v32  ;;  %v595_v35 = vpop.f32.mrf.mxu0  ;;  %2382 = vmatmul.msk.bf16.gmra.mxu1 %vm699_vm2, %v660_v33  ;;  %1603 = vmatmul.bf16.gmra.mxu0 %v2815_v29  ;;  %v3446_v32 = vld [vmem:[%s3804_s5 + $0x1] ss:$0 sm:$0xff]  ;;  %v2830_v33 = vld [vmem:[%s3803_s4 + $0x48] sm:$0xff] }
 0x135   : > { %v596_v38 = vadd.f32 %v3290_v44, %v595_v35 }
 0x136   : > { %vm1034_vm9 = vcmp.ge.f32.partialorder %v1010_v34, 0.0  ;;  %v1051_v36 = vmul.f32 %v3306_v54, %v1010_v34 }
 0x137   : > { %v635_v42 = vmul.f32 %v3301_v48, %v596_v38  ;;  %vm618_vm10 = vcmp.ge.f32.partialorder %v596_v38, 0.0 }
 0x138   : > { %v1067_v39 = vsel %vm1034_vm9, %v1010_v34, %v1051_v36 }
 0x139   : > { %v1077_v40 = vpack.c.bf16 %v1067_v39, %v1066_v37  ;;  %v651_v50 = vsel %vm618_vm10, %v596_v38, %v635_v42  ;;  %v2819_v39 = vld [vmem:[%s3184_s23 + $0xb0] sm:$0xff]  ;;  %s2669_s23 = sld [smem:[#allocation2 + $0x2]] }
 0x13b   : > { %v1012_v41 = vpop.f32.mrf.mxu2  ;;  %2513 = vmatmul.msk.bf16.gmra.mxu3 %vm699_vm2, %v1077_v40 }
 0x13c   : > { %v597_v43 = vpop.f32.mrf.mxu0  ;;  %v1013_v45 = vadd.f32 %v3299_v47, %v1012_v41 }
 0x13d   : > { %v598_v46 = vadd.f32 %v3290_v44, %v597_v43 }
 0x13e   : > { %v1052_v53 = vmul.f32 %v3306_v54, %v1013_v45  ;;  %vm1035_vm12 = vcmp.ge.f32.partialorder %v1013_v45, 0.0 }
 0x13f   : > { %vm619_vm11 = vcmp.ge.f32.partialorder %v598_v46, 0.0  ;;  %v636_v49 = vmul.f32 %v3301_v48, %v598_v46 }
 0x140   : > { %v1068_v62 = vsel %vm1035_vm12, %v1013_v45, %v1052_v53 }
 0x141   : > { %v652_v55 = vsel %vm619_vm11, %v598_v46, %v636_v49 }
 0x142   : > { %v661_v57 = vpack.c.bf16 %v652_v55, %v651_v50  ;;  %v2829_v50 = vld [vmem:[%s3803_s4 + $0x40] sm:$0xff] }
 0x143   : > { %v1014_v56 = vpop.f32.mrf.mxu2 }
 0x144   : > { %v1015_v58 = vadd.f32 %v3299_v47, %v1014_v56  ;;  %v600_v59 = vpop.f32.mrf.mxu0  ;;  %2383 = vmatmul.msk.bf16.gmra.mxu1 %vm699_vm2, %v661_v57  ;;  %1608 = vmatmul.bf16.gmra.mxu0 %v2816_v51 }
 0x145   : > { %v601_v0 = vadd.f32 %v3290_v44, %v600_v59 }
 0x146   : > { %vm1036_vm13 = vcmp.ge.f32.partialorder %v1015_v58, 0.0  ;;  %v1053_v61 = vmul.f32 %v3306_v54, %v1015_v58 }
 0x147   : > { %v637_v5 = vmul.f32 %v3301_v48, %v601_v0  ;;  %vm620_vm14 = vcmp.ge.f32.partialorder %v601_v0, 0.0 }
 0x148   : > { %v1069_v1 = vsel %vm1036_vm13, %v1015_v58, %v1053_v61 }
 0x149   : > { %v1078_v2 = vpack.c.bf16 %v1069_v1, %v1068_v62  ;;  %v653_v11 = vsel %vm620_vm14, %v601_v0, %v637_v5 }
 0x14b   : > { %v1017_v4 = vpop.f32.mrf.mxu2  ;;  %2514 = vmatmul.msk.bf16.gmra.mxu3 %vm699_vm2, %v1078_v2 }
 0x14c   : > { %v602_v6 = vpop.f32.mrf.mxu0  ;;  %v1018_v8 = vadd.f32 %v3299_v47, %v1017_v4 }
 0x14d   : > { %v603_v9 = vadd.f32 %v3290_v44, %v602_v6  ;;  %v2832_v44 = vld [vmem:[%s3803_s4 + $0x58] sm:$0xff] }
 0x14e   : > { %v1054_v14 = vmul.f32 %v3306_v54, %v1018_v8  ;;  %vm1037_vm0 = vcmp.ge.f32.partialorder %v1018_v8, 0.0  ;;  %1758 = vmatpush.bf16.msra.mxu2 %v2832_v44 }
 0x14f   : > { %vm621_vm15 = vcmp.ge.f32.partialorder %v603_v9, 0.0  ;;  %v638_v10 = vmul.f32 %v3301_v48, %v603_v9  ;;  %v2810_v48 = vld [vmem:[%s3805_s6 + $0x28] sm:$0xff] }
 0x150   : > { %v1070_v20 = vsel %vm1037_vm0, %v1018_v8, %v1054_v14  ;;  %1310 = vmatpush.bf16.msrb.mxu1 %v2810_v48  ;;  %v3481_v48 = vld [vmem:[%s3802_s3 + $0x2] ss:$0 sm:$0xff] }
 0x151   : > { %v654_v15 = vsel %vm621_vm15, %v603_v9, %v638_v10 }
 0x152   : > { %v662_v17 = vpack.c.bf16 %v654_v15, %v653_v11  ;;  %1759 = vmatpush.bf16.msra.mxu2 %v2831_v24  ;;  %v3490_v24 = vstv %s2669_s23 }
 0x153   : > { %v1019_v16 = vpop.f32.mrf.mxu2 }
 0x154   : > { %v1020_v18 = vadd.f32 %v3299_v47, %v1019_v16  ;;  %2384 = vmatmul.msk.bf16.gmra.mxu1 %vm699_vm2, %v662_v17  ;;  %1613 = vmatmul.bf16.gmra.mxu0 %v2817_v12 }
 0x155   : > { %1311 = vmatpush.bf16.msrb.mxu1 %v2809_v22 }
 0x156   : > { %vm1038_vm1 = vcmp.ge.f32.partialorder %v1020_v18, 0.0  ;;  %v1055_v19 = vmul.f32 %v3306_v54, %v1020_v18  ;;  %v3435_v54 = vld [vmem:[%s3804_s5] ss:$0 sm:$0xff]  ;;  %1760 = vmatpush.bf16.msra.mxu2 %v2830_v33 }
 0x158   : > { %v1071_v21 = vsel %vm1038_vm1, %v1020_v18, %v1055_v19 }
 0x159   : > { %v1079_v47 = vpack.c.bf16 %v1071_v21, %v1070_v20 }
 0x15a   : > { %1761 = vmatpush.bf16.msra.mxu2 %v2829_v50 }
 0x15b   : > { %2515 = vmatmul.msk.bf16.gmra.mxu3 %vm699_vm2, %v1079_v47 }
 0x161   : > { %v733_v25 = vpop.f32.mrf.mxu0 }
 0x162   : > { %v734_v26 = vadd.f32 %v3435_v54, %v733_v25 }
 0x164   : > { %1618 = vmatmul.bf16.gmra.mxu0 %v2818_v23  ;;  %v790_v29 = vmul.f32 %v3438_v27, %v734_v26  ;;  %vm773_vm3 = vcmp.ge.f32.partialorder %v734_v26, 0.0  ;;  %v2836_v23 = vld [vmem:[%s3805_s6 + $0x58] sm:$0xff] }
 0x165   : > { %1920 = vmatpush.bf16.msra.mxu1 %v2836_v23 }
 0x166   : > { %v806_v35 = vsel %vm773_vm3, %v734_v26, %v790_v29 }
 0x169   : > { %v735_v28 = vpop.f32.mrf.mxu0 }
 0x16a   : > { %v736_v30 = vadd.f32 %v3435_v54, %v735_v28 }
 0x16c   : > { %vm774_vm4 = vcmp.ge.f32.partialorder %v736_v30, 0.0  ;;  %v791_v31 = vmul.f32 %v3438_v27, %v736_v30 }
 0x16e   : > { %v1151_v34 = vpop.f32.mrf.mxu2  ;;  %v807_v36 = vsel %vm774_vm4, %v736_v30, %v791_v31 }
 0x16f   : > { %v822_v37 = vpack.c.bf16 %v807_v36, %v806_v35  ;;  %v1152_v38 = vadd.f32 %v3446_v32, %v1151_v34 }
 0x171   : > { %v738_v40 = vpop.f32.mrf.mxu0  ;;  %2564 = vmatmul.msk.bf16.vlgmr.msrb.gmra.mxu3 %vm699_vm2, %v822_v37  ;;  %v1207_v41 = vmul.f32 %v1152_v38, %v3438_v27  ;;  %vm1191_vm5 = vcmp.ge.f32.partialorder %v1152_v38, 0.0 }
 0x172   : > { %v739_v43 = vadd.f32 %v3435_v54, %v738_v40 }
 0x173   : > { %v1223_v46 = vsel %vm1191_vm5, %v1152_v38, %v1207_v41 }
 0x174   : > { %1623 = vmatmul.bf16.gmra.mxu0 %v2819_v39  ;;  %v792_v52 = vmul.f32 %v3438_v27, %v739_v43  ;;  %vm775_vm7 = vcmp.ge.f32.partialorder %v739_v43, 0.0 }
 0x176   : > { %v1153_v42 = vpop.f32.mrf.mxu2  ;;  %v808_v59 = vsel %vm775_vm7, %v739_v43, %v792_v52 }
 0x177   : > { %v1154_v45 = vadd.f32 %v3446_v32, %v1153_v42 }
 0x179   : > { %vm1192_vm6 = vcmp.ge.f32.partialorder %v1154_v45, 0.0  ;;  %v1208_v49 = vmul.f32 %v1154_v45, %v3438_v27  ;;  %v740_v51 = vpop.f32.mrf.mxu0 }
 0x17a   : > { %v741_v55 = vadd.f32 %v3435_v54, %v740_v51 }
 0x17b   : > { %v1224_v53 = vsel %vm1192_vm6, %v1154_v45, %v1208_v49 }
 0x17c   : > { %v1239_v56 = vpack.c.bf16 %v1224_v53, %v1223_v46  ;;  %vm776_vm8 = vcmp.ge.f32.partialorder %v741_v55, 0.0  ;;  %v793_v57 = vmul.f32 %v3438_v27, %v741_v55 }
 0x17e   : > { %v1156_v58 = vpop.f32.mrf.mxu2  ;;  %2540 = vmatmul.msk.bf16.vlgmr.msrb.gmra.mxu1 %vm699_vm2, %v1239_v56  ;;  %v809_v60 = vsel %vm776_vm8, %v741_v55, %v793_v57 }
 0x17f   : > { %v823_v61 = vpack.c.bf16 %v809_v60, %v808_v59  ;;  %v1157_v62 = vadd.f32 %v3446_v32, %v1156_v58 }
 0x181   : > { %v743_v0 = vpop.f32.mrf.mxu0  ;;  %2565 = vmatmul.msk.bf16.gmra.mxu3 %vm699_vm2, %v823_v61  ;;  %v1209_v1 = vmul.f32 %v1157_v62, %v3438_v27  ;;  %vm1193_vm9 = vcmp.ge.f32.partialorder %v1157_v62, 0.0 }
 0x182   : > { %v744_v3 = vadd.f32 %v3435_v54, %v743_v0 }
 0x183   : > { %v1225_v6 = vsel %vm1193_vm9, %v1157_v62, %v1209_v1 }
 0x184   : > { %1628 = vmatmul.bf16.gmra.mxu0 %v2820_v63  ;;  %v794_v8 = vmul.f32 %v3438_v27, %v744_v3  ;;  %vm777_vm11 = vcmp.ge.f32.partialorder %v744_v3, 0.0 }
 0x186   : > { %v1158_v2 = vpop.f32.mrf.mxu2  ;;  %v810_v14 = vsel %vm777_vm11, %v744_v3, %v794_v8 }
 0x187   : > { %v1159_v4 = vadd.f32 %v3446_v32, %v1158_v2 }
 0x189   : > { %vm1194_vm10 = vcmp.ge.f32.partialorder %v1159_v4, 0.0  ;;  %v1210_v5 = vmul.f32 %v1159_v4, %v3438_v27  ;;  %v745_v7 = vpop.f32.mrf.mxu0 }
 0x18a   : > { %v746_v9 = vadd.f32 %v3435_v54, %v745_v7 }
 0x18b   : > { %v1226_v10 = vsel %vm1194_vm10, %v1159_v4, %v1210_v5 }
 0x18c   : > { %v1240_v11 = vpack.c.bf16 %v1226_v10, %v1225_v6  ;;  %vm778_vm12 = vcmp.ge.f32.partialorder %v746_v9, 0.0  ;;  %v795_v12 = vmul.f32 %v3438_v27, %v746_v9 }
 0x18e   : > { %v1161_v13 = vpop.f32.mrf.mxu2  ;;  %2541 = vmatmul.msk.bf16.gmra.mxu1 %vm699_vm2, %v1240_v11  ;;  %v811_v15 = vsel %vm778_vm12, %v746_v9, %v795_v12 }
 0x18f   : > { %v824_v16 = vpack.c.bf16 %v811_v15, %v810_v14  ;;  %v1162_v17 = vadd.f32 %v3446_v32, %v1161_v13 }
 0x191   : > { %v748_v18 = vpop.f32.mrf.mxu1  ;;  %2566 = vmatmul.msk.bf16.gmra.mxu3 %vm699_vm2, %v824_v16  ;;  %v1594_v44 = vpop.f32.mrf.mxu0  ;;  %v1211_v19 = vmul.f32 %v1162_v17, %v3438_v27  ;;  %vm1195_vm13 = vcmp.ge.f32.partialorder %v1162_v17, 0.0 }
 0x192   : > { %v749_v20 = vadd.f32 %v3435_v54, %v748_v18  ;;  %v1595_v47 = vadd.f32 %v3481_v48, %v1594_v44 }
 0x193   : > { %v1227_v26 = vsel %vm1195_vm13, %v1162_v17, %v1211_v19 }
 0x194   : > { %v796_v28 = vmul.f32 %v3438_v27, %v749_v20  ;;  %v1652_v31 = vmul.f32 %v3490_v24, %v1595_v47  ;;  %vm779_vm15 = vcmp.ge.f32.partialorder %v749_v20, 0.0  ;;  %vm1635_vm0 = vcmp.ge.f32.partialorder %v1595_v47, 0.0 }
 0x196   : > { %v1163_v21 = vpop.f32.mrf.mxu2  ;;  %v1668_v40 = vsel %vm1635_vm0, %v1595_v47, %v1652_v31  ;;  %v812_v42 = vsel %vm779_vm15, %v749_v20, %v796_v28  ;;  %v2835_v20 = vld [vmem:[%s3805_s6 + $0x50] sm:$0xff] }
 0x197   : > { %v1164_v22 = vadd.f32 %v3446_v32, %v1163_v21  ;;  %1921 = vmatpush.bf16.msra.mxu1 %v2835_v20 }
 0x199   : > { %vm1196_vm14 = vcmp.ge.f32.partialorder %v1164_v22, 0.0  ;;  %v1212_v25 = vmul.f32 %v1164_v22, %v3438_v27  ;;  %v750_v29 = vpop.f32.mrf.mxu1  ;;  %v1596_v30 = vpop.f32.mrf.mxu0 }
 0x19a   : > { %v751_v33 = vadd.f32 %v3435_v54, %v750_v29  ;;  %v1597_v34 = vadd.f32 %v3481_v48, %v1596_v30 }
 0x19b   : > { %v1228_v35 = vsel %vm1196_vm14, %v1164_v22, %v1212_v25 }
 0x19c   : > { %v1241_v36 = vpack.c.bf16 %v1228_v35, %v1227_v26  ;;  %vm780_vm1 = vcmp.ge.f32.partialorder %v751_v33, 0.0  ;;  %v797_v37 = vmul.f32 %v3438_v27, %v751_v33  ;;  %vm1636_vm3 = vcmp.ge.f32.partialorder %v1597_v34, 0.0 }
 0x19d   : > { %v1653_v38 = vmul.f32 %v3490_v24, %v1597_v34 }
 0x19e   : > { %v1166_v39 = vpop.f32.mrf.mxu3  ;;  %2542 = vmatmul.msk.bf16.gmra.mxu1 %vm699_vm2, %v1241_v36  ;;  %v813_v43 = vsel %vm780_vm1, %v751_v33, %v797_v37 }
 0x19f   : > { %v1669_v41 = vsel %vm1636_vm3, %v1597_v34, %v1653_v38  ;;  %v825_v46 = vpack.c.bf16 %v813_v43, %v812_v42  ;;  %v1167_v49 = vadd.f32 %v3446_v32, %v1166_v39 }
 0x1a0   : > { %v1684_v45 = vpack.c.bf16 %v1669_v41, %v1668_v40 }
 0x1a1   : > { %v753_v50 = vpop.f32.mrf.mxu1  ;;  %2567 = vmatmul.msk.bf16.gmra.mxu3 %vm699_vm2, %v825_v46  ;;  %v1599_v51 = vpop.f32.mrf.mxu0  ;;  %v1213_v52 = vmul.f32 %v1167_v49, %v3438_v27  ;;  %vm1197_vm4 = vcmp.ge.f32.partialorder %v1167_v49, 0.0 }
 0x1a2   : > { %2695 = vmatmul.msk.bf16.vlgmr.msra.gmra.mxu2 %vm699_vm2, %v1684_v45  ;;  %v754_v53 = vadd.f32 %v3435_v54, %v753_v50  ;;  %v1600_v56 = vadd.f32 %v3481_v48, %v1599_v51 }
 0x1a3   : > { %v1229_v59 = vsel %vm1197_vm4, %v1167_v49, %v1213_v52 }
 0x1a4   : > { %v798_v60 = vmul.f32 %v3438_v27, %v754_v53  ;;  %v1654_v63 = vmul.f32 %v3490_v24, %v1600_v56  ;;  %vm781_vm6 = vcmp.ge.f32.partialorder %v754_v53, 0.0  ;;  %vm1637_vm7 = vcmp.ge.f32.partialorder %v1600_v56, 0.0 }
 0x1a6   : > { %v1168_v55 = vpop.f32.mrf.mxu3  ;;  %v1670_v7 = vsel %vm1637_vm7, %v1600_v56, %v1654_v63  ;;  %v814_v9 = vsel %vm781_vm6, %v754_v53, %v798_v60 }
 0x1a7   : > { %v1169_v57 = vadd.f32 %v3446_v32, %v1168_v55 }
 0x1a9   : > { %vm1198_vm5 = vcmp.ge.f32.partialorder %v1169_v57, 0.0  ;;  %v1214_v58 = vmul.f32 %v1169_v57, %v3438_v27  ;;  %v755_v61 = vpop.f32.mrf.mxu1  ;;  %v1601_v62 = vpop.f32.mrf.mxu0 }
 0x1aa   : > { %v756_v0 = vadd.f32 %v3435_v54, %v755_v61  ;;  %v1602_v1 = vadd.f32 %v3481_v48, %v1601_v62 }
 0x1ab   : > { %v1230_v2 = vsel %vm1198_vm5, %v1169_v57, %v1214_v58 }
 0x1ac   : > { %v1242_v3 = vpack.c.bf16 %v1230_v2, %v1229_v59  ;;  %vm782_vm8 = vcmp.ge.f32.partialorder %v756_v0, 0.0  ;;  %v799_v4 = vmul.f32 %v3438_v27, %v756_v0  ;;  %vm1638_vm9 = vcmp.ge.f32.partialorder %v1602_v1, 0.0 }
 0x1ad   : > { %v1655_v5 = vmul.f32 %v3490_v24, %v1602_v1 }
 0x1ae   : > { %v1171_v6 = vpop.f32.mrf.mxu3  ;;  %2543 = vmatmul.msk.bf16.gmra.mxu1 %vm699_vm2, %v1242_v3  ;;  %v815_v10 = vsel %vm782_vm8, %v756_v0, %v799_v4 }
 0x1af   : > { %v1671_v8 = vsel %vm1638_vm9, %v1602_v1, %v1655_v5  ;;  %v826_v12 = vpack.c.bf16 %v815_v10, %v814_v9  ;;  %v1172_v13 = vadd.f32 %v3446_v32, %v1171_v6 }
 0x1b0   : > { %v1685_v11 = vpack.c.bf16 %v1671_v8, %v1670_v7 }
 0x1b1   : > { %v758_v14 = vpop.f32.mrf.mxu1  ;;  %2568 = vmatmul.msk.bf16.gmra.mxu3 %vm699_vm2, %v826_v12  ;;  %v1604_v15 = vpop.f32.mrf.mxu0  ;;  %v1215_v16 = vmul.f32 %v1172_v13, %v3438_v27  ;;  %vm1199_vm10 = vcmp.ge.f32.partialorder %v1172_v13, 0.0 }
 0x1b2   : > { %2696 = vmatmul.msk.bf16.gmra.mxu2 %vm699_vm2, %v1685_v11  ;;  %v759_v17 = vadd.f32 %v3435_v54, %v758_v14  ;;  %v1605_v44 = vadd.f32 %v3481_v48, %v1604_v15 }
 0x1b3   : > { %v1231_v47 = vsel %vm1199_vm10, %v1172_v13, %v1215_v16 }
 0x1b4   : > { %v800_v22 = vmul.f32 %v3438_v27, %v759_v17  ;;  %v1656_v26 = vmul.f32 %v3490_v24, %v1605_v44  ;;  %vm783_vm12 = vcmp.ge.f32.partialorder %v759_v17, 0.0  ;;  %vm1639_vm13 = vcmp.ge.f32.partialorder %v1605_v44, 0.0 }
 0x1b6   : > { %v1173_v18 = vpop.f32.mrf.mxu3  ;;  %v1672_v36 = vsel %vm1639_vm13, %v1605_v44, %v1656_v26  ;;  %v816_v38 = vsel %vm783_vm12, %v759_v17, %v800_v22  ;;  %v2834_v17 = vld [vmem:[%s3805_s6 + $0x48] sm:$0xff] }
 0x1b7   : > { %v1174_v19 = vadd.f32 %v3446_v32, %v1173_v18  ;;  %1922 = vmatpush.bf16.msra.mxu1 %v2834_v17 }
 0x1b9   : > { %vm1200_vm11 = vcmp.ge.f32.partialorder %v1174_v19, 0.0  ;;  %v1216_v21 = vmul.f32 %v1174_v19, %v3438_v27  ;;  %v760_v23 = vpop.f32.mrf.mxu1  ;;  %v1606_v25 = vpop.f32.mrf.mxu0 }
 0x1ba   : > { %v761_v28 = vadd.f32 %v3435_v54, %v760_v23  ;;  %v1607_v29 = vadd.f32 %v3481_v48, %v1606_v25 }
 0x1bb   : > { %v1232_v30 = vsel %vm1200_vm11, %v1174_v19, %v1216_v21 }
 0x1bc   : > { %v1243_v31 = vpack.c.bf16 %v1232_v30, %v1231_v47  ;;  %vm784_vm14 = vcmp.ge.f32.partialorder %v761_v28, 0.0  ;;  %v801_v33 = vmul.f32 %v3438_v27, %v761_v28  ;;  %vm1640_vm15 = vcmp.ge.f32.partialorder %v1607_v29, 0.0 }
 0x1bd   : > { %v1657_v34 = vmul.f32 %v3490_v24, %v1607_v29 }
 0x1be   : > { %v1176_v35 = vpop.f32.mrf.mxu3  ;;  %2544 = vmatmul.msk.bf16.gmra.mxu1 %vm699_vm2, %v1243_v31  ;;  %v817_v39 = vsel %vm784_vm14, %v761_v28, %v801_v33 }
 0x1bf   : > { %v1673_v37 = vsel %vm1640_vm15, %v1607_v29, %v1657_v34  ;;  %v827_v41 = vpack.c.bf16 %v817_v39, %v816_v38  ;;  %v1177_v42 = vadd.f32 %v3446_v32, %v1176_v35 }
 0x1c0   : > { %v1686_v40 = vpack.c.bf16 %v1673_v37, %v1672_v36 }
 0x1c1   : > { %v763_v43 = vpop.f32.mrf.mxu1  ;;  %2569 = vmatmul.msk.bf16.gmra.mxu3 %vm699_vm2, %v827_v41  ;;  %v1609_v45 = vpop.f32.mrf.mxu0  ;;  %v1217_v46 = vmul.f32 %v1177_v42, %v3438_v27  ;;  %vm1201_vm0 = vcmp.ge.f32.partialorder %v1177_v42, 0.0 }
 0x1c2   : > { %2697 = vmatmul.msk.bf16.gmra.mxu2 %vm699_vm2, %v1686_v40  ;;  %v764_v49 = vadd.f32 %v3435_v54, %v763_v43  ;;  %v1610_v51 = vadd.f32 %v3481_v48, %v1609_v45 }
 0x1c3   : > { %v1233_v55 = vsel %vm1201_vm0, %v1177_v42, %v1217_v46 }
 0x1c4   : > { %v802_v56 = vmul.f32 %v3438_v27, %v764_v49  ;;  %v1658_v59 = vmul.f32 %v3490_v24, %v1610_v51  ;;  %vm785_vm3 = vcmp.ge.f32.partialorder %v764_v49, 0.0  ;;  %vm1641_vm4 = vcmp.ge.f32.partialorder %v1610_v51, 0.0 }
 0x1c6   : > { %v1178_v50 = vpop.f32.mrf.mxu3  ;;  %v1674_v3 = vsel %vm1641_vm4, %v1610_v51, %v1658_v59  ;;  %v818_v5 = vsel %vm785_vm3, %v764_v49, %v802_v56 }
 0x1c7   : > { %v1179_v52 = vadd.f32 %v3446_v32, %v1178_v50 }
 0x1c9   : > { %vm1202_vm1 = vcmp.ge.f32.partialorder %v1179_v52, 0.0  ;;  %v1218_v53 = vmul.f32 %v1179_v52, %v3438_v27  ;;  %v765_v57 = vpop.f32.mrf.mxu1  ;;  %v1611_v58 = vpop.f32.mrf.mxu0 }
 0x1ca   : > { %v766_v60 = vadd.f32 %v3435_v54, %v765_v57  ;;  %v1612_v61 = vadd.f32 %v3481_v48, %v1611_v58  ;;  %v2833_v58 = vld [vmem:[%s3805_s6 + $0x40] sm:$0xff] }
 0x1cb   : > { %v1234_v62 = vsel %vm1202_vm1, %v1179_v52, %v1218_v53  ;;  %1923 = vmatpush.bf16.msra.mxu1 %v2833_v58 }
 0x1cc   : > { %v1244_v63 = vpack.c.bf16 %v1234_v62, %v1233_v55  ;;  %vm786_vm5 = vcmp.ge.f32.partialorder %v766_v60, 0.0  ;;  %v803_v0 = vmul.f32 %v3438_v27, %v766_v60  ;;  %vm1642_vm6 = vcmp.ge.f32.partialorder %v1612_v61, 0.0 }
 0x1cd   : > { %v1659_v1 = vmul.f32 %v3490_v24, %v1612_v61 }
 0x1ce   : > { %v1181_v2 = vpop.f32.mrf.mxu3  ;;  %2545 = vmatmul.msk.bf16.gmra.mxu1 %vm699_vm2, %v1244_v63  ;;  %v819_v6 = vsel %vm786_vm5, %v766_v60, %v803_v0 }
 0x1cf   : > { %v1675_v4 = vsel %vm1642_vm6, %v1612_v61, %v1659_v1  ;;  %v828_v8 = vpack.c.bf16 %v819_v6, %v818_v5  ;;  %v1182_v9 = vadd.f32 %v3446_v32, %v1181_v2 }
 0x1d0   : > { %v1687_v7 = vpack.c.bf16 %v1675_v4, %v1674_v3 }
 0x1d1   : > { %v768_v10 = vpop.f32.mrf.mxu1  ;;  %2570 = vmatmul.msk.bf16.gmra.mxu3 %vm699_vm2, %v828_v8  ;;  %v1614_v11 = vpop.f32.mrf.mxu0  ;;  %v1219_v12 = vmul.f32 %v1182_v9, %v3438_v27  ;;  %vm1203_vm7 = vcmp.ge.f32.partialorder %v1182_v9, 0.0 }
 0x1d2   : > { %2698 = vmatmul.msk.bf16.gmra.mxu2 %vm699_vm2, %v1687_v7  ;;  %v769_v13 = vadd.f32 %v3435_v54, %v768_v10  ;;  %v1615_v15 = vadd.f32 %v3481_v48, %v1614_v11 }
 0x1d3   : > { %v1235_v44 = vsel %vm1203_vm7, %v1182_v9, %v1219_v12 }
 0x1d4   : > { %v804_v19 = vmul.f32 %v3438_v27, %v769_v13  ;;  %v1660_v47 = vmul.f32 %v3490_v24, %v1615_v15  ;;  %vm787_vm9 = vcmp.ge.f32.partialorder %v769_v13, 0.0  ;;  %vm1643_vm10 = vcmp.ge.f32.partialorder %v1615_v15, 0.0 }
 0x1d6   : > { %v1183_v14 = vpop.f32.mrf.mxu3  ;;  %v820_v31 = vsel %vm787_vm9, %v769_v13, %v804_v19  ;;  %v1676_v33 = vsel %vm1643_vm10, %v1615_v15, %v1660_v47 }
 0x1d7   : > { %v1184_v16 = vadd.f32 %v3446_v32, %v1183_v14  ;;  %v2840_v14 = vld [vmem:[%s3807_s8 + $0x18] sm:$0xff] }
 0x1d8   : > { %2122 = vmatpush.bf16.msra.mxu3 %v2840_v14 }
 0x1d9   : > { %vm1204_vm8 = vcmp.ge.f32.partialorder %v1184_v16, 0.0  ;;  %v1220_v18 = vmul.f32 %v1184_v16, %v3438_v27  ;;  %v770_v20 = vpop.f32.mrf.mxu1  ;;  %v1616_v21 = vpop.f32.mrf.mxu0 }
 0x1da   : > { %v771_v22 = vadd.f32 %v3435_v54, %v770_v20  ;;  %v1617_v23 = vadd.f32 %v3481_v48, %v1616_v21 }
 0x1db   : > { %v1236_v25 = vsel %vm1204_vm8, %v1184_v16, %v1220_v18 }
 0x1dc   : > { %v1245_v26 = vpack.c.bf16 %v1236_v25, %v1235_v44  ;;  %vm788_vm11 = vcmp.ge.f32.partialorder %v771_v22, 0.0  ;;  %v805_v28 = vmul.f32 %v3438_v27, %v771_v22  ;;  %vm1644_vm12 = vcmp.ge.f32.partialorder %v1617_v23, 0.0 }
 0x1dd   : > { %v1661_v29 = vmul.f32 %v3490_v24, %v1617_v23 }
 0x1de   : > { %v1186_v30 = vpop.f32.mrf.mxu3  ;;  %2546 = vmatmul.msk.bf16.gmra.mxu1 %vm699_vm2, %v1245_v26  ;;  %v821_v34 = vsel %vm788_vm11, %v771_v22, %v805_v28 }
 0x1df   : > { %v1677_v35 = vsel %vm1644_vm12, %v1617_v23, %v1661_v29  ;;  %v829_v54 = vpack.c.bf16 %v821_v34, %v820_v31  ;;  %v1187_v37 = vadd.f32 %v3446_v32, %v1186_v30 }
 0x1e0   : > { %v1688_v36 = vpack.c.bf16 %v1677_v35, %v1676_v33 }
 0x1e1   : > { %2571 = vmatmul.msk.bf16.gmra.mxu3 %vm699_vm2, %v829_v54  ;;  %v1619_v38 = vpop.f32.mrf.mxu0  ;;  %v1221_v39 = vmul.f32 %v1187_v37, %v3438_v27  ;;  %vm1205_vm13 = vcmp.ge.f32.partialorder %v1187_v37, 0.0  ;;  %v2839_v54 = vld [vmem:[%s3807_s8 + $0x10] sm:$0xff] }
 0x1e2   : > { %2699 = vmatmul.msk.bf16.gmra.mxu2 %vm699_vm2, %v1688_v36  ;;  %v1620_v41 = vadd.f32 %v3481_v48, %v1619_v38  ;;  %2123 = vmatpush.bf16.msra.mxu3 %v2839_v54 }
 0x1e3   : > { %v1237_v43 = vsel %vm1205_vm13, %v1187_v37, %v1221_v39 }
 0x1e4   : > { %v1662_v49 = vmul.f32 %v3490_v24, %v1620_v41  ;;  %vm1645_vm15 = vcmp.ge.f32.partialorder %v1620_v41, 0.0 }
 0x1e6   : > { %v1188_v40 = vpop.f32.mrf.mxu3  ;;  %v1678_v55 = vsel %vm1645_vm15, %v1620_v41, %v1662_v49 }
 0x1e7   : > { %v1189_v42 = vadd.f32 %v3446_v32, %v1188_v40 }
 0x1e9   : > { %vm1206_vm14 = vcmp.ge.f32.partialorder %v1189_v42, 0.0  ;;  %v1222_v45 = vmul.f32 %v1189_v42, %v3438_v27  ;;  %v1621_v46 = vpop.f32.mrf.mxu0 }
 0x1ea   : > { %v1622_v51 = vadd.f32 %v3481_v48, %v1621_v46 }
 0x1eb   : > { %v1238_v50 = vsel %vm1206_vm14, %v1189_v42, %v1222_v45 }
 0x1ec   : > { %v1246_v52 = vpack.c.bf16 %v1238_v50, %v1237_v43  ;;  %vm1646_vm0 = vcmp.ge.f32.partialorder %v1622_v51, 0.0  ;;  %v1663_v53 = vmul.f32 %v3490_v24, %v1622_v51 }
 0x1ee   : > { %2547 = vmatmul.msk.bf16.gmra.mxu1 %vm699_vm2, %v1246_v52  ;;  %v1679_v56 = vsel %vm1646_vm0, %v1622_v51, %v1663_v53 }
 0x1ef   : > { %v1689_v32 = vpack.c.bf16 %v1679_v56, %v1678_v55 }
 0x1f1   : > { %v1624_v57 = vpop.f32.mrf.mxu0 }
 0x1f2   : > { %2700 = vmatmul.msk.bf16.gmra.mxu2 %vm699_vm2, %v1689_v32  ;;  %v1625_v59 = vadd.f32 %v3481_v48, %v1624_v57 }
 0x1f4   : > { %v1664_v61 = vmul.f32 %v3490_v24, %v1625_v59  ;;  %vm1647_vm1 = vcmp.ge.f32.partialorder %v1625_v59, 0.0 }
 0x1f6   : > { %v1680_v0 = vsel %vm1647_vm1, %v1625_v59, %v1664_v61 }
 0x1f9   : > { %v1626_v60 = vpop.f32.mrf.mxu0 }
 0x1fa   : > { %v1627_v62 = vadd.f32 %v3481_v48, %v1626_v60  ;;  %v2838_v60 = vld [vmem:[%s3807_s8 + $0x8] sm:$0xff] }
 0x1fb   : > { %v3591_v12 = vpop.f32.mrf.mxu1  ;;  %2124 = vmatpush.bf16.msra.mxu3 %v2838_v60 }
 0x1fc   : > { %vm1648_vm3 = vcmp.ge.f32.partialorder %v1627_v62, 0.0  ;;  %v1665_v63 = vmul.f32 %v3490_v24, %v1627_v62 }
 0x1fe   : > { %v1681_v1 = vsel %vm1648_vm3, %v1627_v62, %v1665_v63 }
 0x1ff   : > { %v1690_v2 = vpack.c.bf16 %v1681_v1, %v1680_v0 }
 0x201   : > { %v1629_v3 = vpop.f32.mrf.mxu0 }
 0x202   : > { %2701 = vmatmul.msk.bf16.gmra.mxu2 %vm699_vm2, %v1690_v2  ;;  %v1630_v4 = vadd.f32 %v3481_v48, %v1629_v3 }
 0x203   : > { %v3593_v13 = vpop.f32.mrf.mxu1 }
 0x204   : > { %v1666_v6 = vmul.f32 %v3490_v24, %v1630_v4  ;;  %vm1649_vm4 = vcmp.ge.f32.partialorder %v1630_v4, 0.0 }
 0x206   : > { %v1682_v9 = vsel %vm1649_vm4, %v1630_v4, %v1666_v6 }
 0x209   : > { %v1631_v5 = vpop.f32.mrf.mxu0 }
 0x20a   : > { %v1632_v7 = vadd.f32 %v3481_v48, %v1631_v5  ;;  %v3601_v48 = vld [vmem:[%s3804_s5 + $0x2] ss:$0 sm:$0xff] }
 0x20c   : > { %vm1650_vm5 = vcmp.ge.f32.partialorder %v1632_v7, 0.0  ;;  %v1667_v8 = vmul.f32 %v3490_v24, %v1632_v7  ;;  %v3603_v24 = vpop.f32.mrf.mxu1 }
 0x20e   : > { %v1683_v10 = vsel %vm1650_vm5, %v1632_v7, %v1667_v8 }
 0x20f   : > { %v1691_v11 = vpack.c.bf16 %v1683_v10, %v1682_v9 }
 0x212   : > { %2702 = vmatmul.msk.bf16.gmra.mxu2 %vm699_vm2, %v1691_v11 }
 0x214   : > { %v3609_v20 = vpop.f32.mrf.mxu1 }
 0x21c   : > { %v3613_v26 = vpop.f32.mrf.mxu1 }
 0x224   : > { %v3622_v37 = vpop.f32.mrf.mxu1 }
 0x225   : > { %v1763_v15 = vpop.f32.mrf.mxu2 }
 0x226   : > { %v1764_v16 = vadd.f32 %v3601_v48, %v1763_v15 }
 0x228   : > { %v1819_v18 = vmul.f32 %v1764_v16, %v3438_v27  ;;  %vm1803_vm6 = vcmp.ge.f32.partialorder %v1764_v16, 0.0 }
 0x22a   : > { %v1835_v21 = vsel %vm1803_vm6, %v1764_v16, %v1819_v18 }
 0x22c   : > { %v3627_v42 = vpop.f32.mrf.mxu1 }
 0x22d   : > { %v1765_v17 = vpop.f32.mrf.mxu2 }
 0x22e   : > { %v1766_v44 = vadd.f32 %v3601_v48, %v1765_v17 }
 0x230   : > { %vm1804_vm7 = vcmp.ge.f32.partialorder %v1766_v44, 0.0  ;;  %v1820_v19 = vmul.f32 %v1766_v44, %v3438_v27 }
 0x232   : > { %v1836_v47 = vsel %vm1804_vm7, %v1766_v44, %v1820_v19 }
 0x233   : > { %v1851_v22 = vpack.c.bf16 %v1836_v47, %v1835_v21  ;;  %v2837_v21 = vld [vmem:[%s3807_s8] sm:$0xff] }
 0x234   : > { %v3631_v51 = vpop.f32.mrf.mxu1  ;;  %2125 = vmatpush.bf16.msra.mxu3 %v2837_v21 }
 0x235   : > { %v1768_v23 = vpop.f32.mrf.mxu2  ;;  %2727 = vmatmul.msk.bf16.vlgmr.msra.gmra.mxu1 %vm699_vm2, %v1851_v22 }
 0x236   : > { %v1769_v25 = vadd.f32 %v3601_v48, %v1768_v23 }
 0x238   : > { %v1821_v29 = vmul.f32 %v1769_v25, %v3438_v27  ;;  %vm1805_vm8 = vcmp.ge.f32.partialorder %v1769_v25, 0.0 }
 0x23a   : > { %v1837_v33 = vsel %vm1805_vm8, %v1769_v25, %v1821_v29 }
 0x23c   : > { %v3640_v61 = vpop.f32.mrf.mxu1 }
 0x23d   : > { %v1770_v28 = vpop.f32.mrf.mxu2 }
 0x23e   : > { %v1771_v30 = vadd.f32 %v3601_v48, %v1770_v28 }
 0x240   : > { %vm1806_vm9 = vcmp.ge.f32.partialorder %v1771_v30, 0.0  ;;  %v1822_v31 = vmul.f32 %v1771_v30, %v3438_v27 }
 0x242   : > { %v1838_v34 = vsel %vm1806_vm9, %v1771_v30, %v1822_v31  ;;  %v1410_v31 = vpop.f32.mrf.mxu3 }
 0x243   : > { %v1852_v35 = vpack.c.bf16 %v1838_v34, %v1837_v33 }
 0x244   : > { %v3644_v1 = vpop.f32.mrf.mxu1 }
 0x245   : > { %v1773_v36 = vpop.f32.mrf.mxu2  ;;  %2728 = vmatmul.msk.bf16.gmra.mxu1 %vm699_vm2, %v1852_v35 }
 0x246   : > { %v1774_v38 = vadd.f32 %v3601_v48, %v1773_v36 }
 0x248   : > { %v1823_v40 = vmul.f32 %v1774_v38, %v3438_v27  ;;  %vm1807_vm10 = vcmp.ge.f32.partialorder %v1774_v38, 0.0 }
 0x24a   : > { %v1839_v45 = vsel %vm1807_vm10, %v1774_v38, %v1823_v40 }
 0x24c   : > { %v3650_v9 = vpop.f32.mrf.mxu1 }
 0x24d   : > { %v1775_v39 = vpop.f32.mrf.mxu2 }
 0x24e   : > { %v1776_v41 = vadd.f32 %v3601_v48, %v1775_v39  ;;  %v1412_v39 = vpop.f32.mrf.mxu3 }
 0x250   : > { %vm1808_vm11 = vcmp.ge.f32.partialorder %v1776_v41, 0.0  ;;  %v1824_v43 = vmul.f32 %v1776_v41, %v3438_v27 }
 0x252   : > { %v1840_v46 = vsel %vm1808_vm11, %v1776_v41, %v1824_v43 }
 0x253   : > { %v1853_v49 = vpack.c.bf16 %v1840_v46, %v1839_v45 }
 0x254   : > { %v3656_v17 = vpop.f32.mrf.mxu1 }
 0x255   : > { %v1778_v50 = vpop.f32.mrf.mxu2  ;;  %2729 = vmatmul.msk.bf16.gmra.mxu1 %vm699_vm2, %v1853_v49 }
 0x256   : > { %v1779_v52 = vadd.f32 %v3601_v48, %v1778_v50 }
 0x258   : > { %v1825_v55 = vmul.f32 %v1779_v52, %v3438_v27  ;;  %vm1809_vm12 = vcmp.ge.f32.partialorder %v1779_v52, 0.0 }
 0x25a   : > { %v1841_v57 = vsel %vm1809_vm12, %v1779_v52, %v1825_v55 }
 0x25c   : > { %v3663_v23 = vpop.f32.mrf.mxu1 }
 0x25d   : > { %v1780_v53 = vpop.f32.mrf.mxu2 }
 0x25e   : > { %v1781_v56 = vadd.f32 %v3601_v48, %v1780_v53  ;;  %v1415_v53 = vpop.f32.mrf.mxu3 }
 0x260   : > { %vm1810_vm13 = vcmp.ge.f32.partialorder %v1781_v56, 0.0  ;;  %v1826_v32 = vmul.f32 %v1781_v56, %v3438_v27 }
 0x262   : > { %v1842_v58 = vsel %vm1810_vm13, %v1781_v56, %v1826_v32 }
 0x263   : > { %v1854_v59 = vpack.c.bf16 %v1842_v58, %v1841_v57  ;;  %v1411_v57 = vadd.f32 %v1410_v31, %v3591_v12  ;;  %v3684_v58 = vld [vmem:[%s3806_s7] ss:$0 sm:$0xff] }
 0x264   : > { %v3669_v36 = vpop.f32.mrf.mxu1 }
 0x265   : > { %v1783_v62 = vpop.f32.mrf.mxu2  ;;  %2730 = vmatmul.msk.bf16.gmra.mxu1 %vm699_vm2, %v1854_v59 }
 0x266   : > { %v1784_v63 = vadd.f32 %v3601_v48, %v1783_v62  ;;  %v1417_v56 = vpop.f32.mrf.mxu3  ;;  %v3688_v62 = vstv %s2295_s28  ;;  %s2958_s28 = scalar_lea.hbm %s2957_s18, 128 }
 0x267   : > { %p2959_p3 = scmp.ne.s32.totalorder %s2957_s18, %s2958_s28  ;;  %p2964_p7 = scmp.lt.s32.totalorder %s2962_s24, %s2958_s28 }
 0x268   : > { %v1827_v2 = vmul.f32 %v1784_v63, %v3438_v27  ;;  %vm1811_vm14 = vcmp.ge.f32.partialorder %v1784_v63, 0.0 }
 0x269   : > { %p2960_p4 = pnand %p2959_p3, %p3130_p11  ;;  %p2965_p8 = por %p2964_p7, %p2963_p6 }
 0x26a   : > { %v1843_v5 = vsel %vm1811_vm14, %v1784_v63, %v1827_v2 }
 0x26b   : > { %p2961_p5 = pneg %p2960_p4 }
 0x26c   : > { %v3674_v45 = vpop.f32.mrf.mxu1 }
 0x26d   : > { %v1785_v0 = vpop.f32.mrf.mxu2  ;;  %p2966_p9 = pnand %p2965_p8, %p2961_p5 }
 0x26e   : > { %v1786_v3 = vadd.f32 %v3601_v48, %v1785_v0  ;;  %v1420_v60 = vpop.f32.mrf.mxu3 }
 0x270   : > { %vm1812_vm15 = vcmp.ge.f32.partialorder %v1786_v3, 0.0  ;;  %v1828_v4 = vmul.f32 %v1786_v3, %v3438_v27 }
 0x272   : > { %v1844_v6 = vsel %vm1812_vm15, %v1786_v3, %v1828_v4 }
 0x273   : > { %v1855_v7 = vpack.c.bf16 %v1844_v6, %v1843_v5 }
 0x274   : > { %v3678_v55 = vpop.f32.mrf.mxu1 }
 0x275   : > { %v1788_v8 = vpop.f32.mrf.mxu2  ;;  %2731 = vmatmul.msk.bf16.gmra.mxu1 %vm699_vm2, %v1855_v7 }
 0x276   : > { %v1789_v10 = vadd.f32 %v3601_v48, %v1788_v8  ;;  %v1422_v8 = vpop.f32.mrf.mxu3 }
 0x278   : > { %v1829_v14 = vmul.f32 %v1789_v10, %v3438_v27  ;;  %vm1813_vm0 = vcmp.ge.f32.partialorder %v1789_v10, 0.0 }
 0x27a   : > { %v1845_v18 = vsel %vm1813_vm0, %v1789_v10, %v1829_v14 }
 0x27d   : > { %v1790_v11 = vpop.f32.mrf.mxu2 }
 0x27e   : > { %v1791_v15 = vadd.f32 %v3601_v48, %v1790_v11  ;;  %v1418_v11 = vadd.f32 %v1417_v56, %v3609_v20 }
 0x280   : > { %vm1814_vm1 = vcmp.ge.f32.partialorder %v1791_v15, 0.0  ;;  %v1830_v16 = vmul.f32 %v1791_v15, %v3438_v27 }
 0x282   : > { %v1846_v44 = vsel %vm1814_vm1, %v1791_v15, %v1830_v16 }
 0x283   : > { %v1856_v19 = vpack.c.bf16 %v1846_v44, %v1845_v18 }
 0x285   : > { %v1793_v47 = vpop.f32.mrf.mxu2  ;;  %2732 = vmatmul.msk.bf16.gmra.mxu1 %vm699_vm2, %v1856_v19  ;;  %v1425_v19 = vpop.f32.mrf.mxu3 }
 0x286   : > { %v1794_v22 = vadd.f32 %v3601_v48, %v1793_v47 }
 0x288   : > { %v1831_v28 = vmul.f32 %v1794_v22, %v3438_v27  ;;  %vm1815_vm3 = vcmp.ge.f32.partialorder %v1794_v22, 0.0 }
 0x28a   : > { %v1847_v33 = vsel %vm1815_vm3, %v1794_v22, %v1831_v28  ;;  %v1421_v28 = vadd.f32 %v1420_v60, %v3613_v26 }
 0x28d   : > { %v1795_v25 = vpop.f32.mrf.mxu2 }
 0x28e   : > { %v1796_v29 = vadd.f32 %v3601_v48, %v1795_v25 }
 0x290   : > { %vm1816_vm4 = vcmp.ge.f32.partialorder %v1796_v29, 0.0  ;;  %v1832_v30 = vmul.f32 %v1796_v29, %v3438_v27 }
 0x292   : > { %v1848_v34 = vsel %vm1816_vm4, %v1796_v29, %v1832_v30  ;;  %v1427_v29 = vpop.f32.mrf.mxu3  ;;  %v1423_v30 = vadd.f32 %v1422_v8, %v3622_v37 }
 0x293   : > { %v1857_v35 = vpack.c.bf16 %v1848_v34, %v1847_v33 }
 0x295   : > { %v1798_v54 = vpop.f32.mrf.mxu2  ;;  %2733 = vmatmul.msk.bf16.gmra.mxu1 %vm699_vm2, %v1857_v35 }
 0x296   : > { %v1799_v38 = vadd.f32 %v3601_v48, %v1798_v54 }
 0x298   : > { %v1833_v41 = vmul.f32 %v1799_v38, %v3438_v27  ;;  %vm1817_vm5 = vcmp.ge.f32.partialorder %v1799_v38, 0.0 }
 0x29a   : > { %v1849_v49 = vsel %vm1817_vm5, %v1799_v38, %v1833_v41 }
 0x29d   : > { %v1800_v40 = vpop.f32.mrf.mxu2 }
 0x29e   : > { %v1801_v43 = vadd.f32 %v3601_v48, %v1800_v40  ;;  %v1430_v40 = vpop.f32.mrf.mxu3 }
 0x2a0   : > { %vm1818_vm6 = vcmp.ge.f32.partialorder %v1801_v43, 0.0  ;;  %v1834_v46 = vmul.f32 %v1801_v43, %v3438_v27  ;;  %v1413_v27 = vadd.f32 %v1412_v39, %v3593_v13  ;;  %v1416_v13 = vadd.f32 %v1415_v53, %v3603_v24 }
 0x2a2   : > { %v1850_v50 = vsel %vm1818_vm6, %v1801_v43, %v1834_v46  ;;  %v1426_v46 = vadd.f32 %v1425_v19, %v3627_v42 }
 0x2a3   : > { %v1858_v52 = vpack.c.bf16 %v1850_v50, %v1849_v49  ;;  %v1428_v49 = vadd.f32 %v1427_v29, %v3631_v51 }
 0x2a5   : > { %2734 = vmatmul.msk.bf16.gmra.mxu1 %vm699_vm2, %v1858_v52 }
 0x2a6   : > { %v1432_v56 = vpop.f32.mrf.mxu3 }
 0x2b2   : > { %v1925_v32 = vpop.f32.mrf.mxu1 }
 0x2b3   : > { %v1965_v48 = vadd.f32 %v1925_v32, %v1411_v57 }
 0x2b5   : > { %v1985_v59 = vadd.f32 %v3684_v58, %v1965_v48 }
 0x2b7   : > { %v2018_v2 = vmul.f32 %v3688_v62, %v1985_v59  ;;  %vm2001_vm7 = vcmp.ge.f32.partialorder %v1985_v59, 0.0 }
 0x2b9   : > { %v2034_v4 = vsel %vm2001_vm7, %v1985_v59, %v2018_v2  ;;  %v1433_v2 = vadd.f32 %v1432_v56, %v3644_v1 }
 0x2ba   : > { %v1927_v63 = vpop.f32.mrf.mxu1 }
 0x2bb   : > { %v1966_v0 = vadd.f32 %v1927_v63, %v1413_v27  ;;  %v1431_v63 = vadd.f32 %v1430_v40, %v3640_v61 }
 0x2bd   : > { %v1986_v3 = vadd.f32 %v3684_v58, %v1966_v0  ;;  %v1435_v0 = vpop.f32.mrf.mxu3 }
 0x2bf   : > { %vm2002_vm8 = vcmp.ge.f32.partialorder %v1986_v3, 0.0  ;;  %v2019_v12 = vmul.f32 %v3688_v62, %v1986_v3 }
 0x2c1   : > { %v2035_v5 = vsel %vm2002_vm8, %v1986_v3, %v2019_v12 }
 0x2c2   : > { %v2050_v6 = vpack.c.bf16 %v2035_v5, %v2034_v4  ;;  %v1930_v7 = vpop.f32.mrf.mxu1 }
 0x2c3   : > { %v1967_v10 = vadd.f32 %v1930_v7, %v1416_v13 }
 0x2c4   : > { %2751 = vmatmul.msk.bf16.vlgmr.msra.gmra.mxu3 %vm699_vm2, %v2050_v6 }
 0x2c5   : > { %v1987_v14 = vadd.f32 %v3684_v58, %v1967_v10  ;;  %v1437_v13 = vpop.f32.mrf.mxu3 }
 0x2c7   : > { %v2020_v18 = vmul.f32 %v3688_v62, %v1987_v14  ;;  %vm2003_vm9 = vcmp.ge.f32.partialorder %v1987_v14, 0.0 }
 0x2c9   : > { %v2036_v24 = vsel %vm2003_vm9, %v1987_v14, %v2020_v18  ;;  %v1436_v14 = vadd.f32 %v1435_v0, %v3650_v9 }
 0x2ca   : > { %v1932_v15 = vpop.f32.mrf.mxu1 }
 0x2cb   : > { %v1968_v16 = vadd.f32 %v1932_v15, %v1418_v11  ;;  %v1438_v15 = vadd.f32 %v1437_v13, %v3656_v17 }
 0x2cd   : > { %v1988_v44 = vadd.f32 %v3684_v58, %v1968_v16  ;;  %v1440_v18 = vpop.f32.mrf.mxu3 }
 0x2cf   : > { %vm2004_vm10 = vcmp.ge.f32.partialorder %v1988_v44, 0.0  ;;  %v2021_v21 = vmul.f32 %v3688_v62, %v1988_v44 }
 0x2d1   : > { %v2037_v47 = vsel %vm2004_vm10, %v1988_v44, %v2021_v21 }
 0x2d2   : > { %v1935_v22 = vpop.f32.mrf.mxu1  ;;  %v2051_v25 = vpack.c.bf16 %v2037_v47, %v2036_v24 }
 0x2d3   : > { %v1969_v20 = vadd.f32 %v1935_v22, %v1421_v28 }
 0x2d4   : > { %2752 = vmatmul.msk.bf16.gmra.mxu3 %vm699_vm2, %v2051_v25 }
 0x2d5   : > { %v1989_v31 = vadd.f32 %v3684_v58, %v1969_v20  ;;  %v1441_v20 = vadd.f32 %v1440_v18, %v3663_v23  ;;  %v1442_v17 = vpop.f32.mrf.mxu3 }
 0x2d7   : > { %v2022_v35 = vmul.f32 %v3688_v62, %v1989_v31  ;;  %vm2005_vm11 = vcmp.ge.f32.partialorder %v1989_v31, 0.0 }
 0x2d9   : > { %v2038_v39 = vsel %vm2005_vm11, %v1989_v31, %v2022_v35 }
 0x2da   : > { %v1937_v33 = vpop.f32.mrf.mxu1 }
 0x2db   : > { %v1970_v34 = vadd.f32 %v1937_v33, %v1423_v30  ;;  %v1443_v30 = vadd.f32 %v1442_v17, %v3669_v36 }
 0x2dd   : > { %v1990_v54 = vadd.f32 %v3684_v58, %v1970_v34 }
 0x2df   : > { %vm2006_vm12 = vcmp.ge.f32.partialorder %v1990_v54, 0.0  ;;  %v2023_v38 = vmul.f32 %v3688_v62, %v1990_v54 }
 0x2e1   : > { %v2039_v26 = vsel %vm2006_vm12, %v1990_v54, %v2023_v38  ;;  %v1445_v38 = vpop.f32.mrf.mxu3 }
 0x2e2   : > { %v1940_v41 = vpop.f32.mrf.mxu1  ;;  %v2052_v43 = vpack.c.bf16 %v2039_v26, %v2038_v39 }
 0x2e3   : > { %v1971_v37 = vadd.f32 %v1940_v41, %v1426_v46 }
 0x2e4   : > { %2753 = vmatmul.msk.bf16.gmra.mxu3 %vm699_vm2, %v2052_v43  ;;  %v1446_v43 = vadd.f32 %v1445_v38, %v3674_v45 }
 0x2e5   : > { %v1991_v50 = vadd.f32 %v3684_v58, %v1971_v37 }
 0x2e7   : > { %v2024_v32 = vmul.f32 %v3688_v62, %v1991_v50  ;;  %vm2007_vm13 = vcmp.ge.f32.partialorder %v1991_v50, 0.0 }
 0x2e9   : > { %v2040_v27 = vsel %vm2007_vm13, %v1991_v50, %v2024_v32  ;;  %v1447_v46 = vpop.f32.mrf.mxu3 }
 0x2ea   : > { %v1942_v52 = vpop.f32.mrf.mxu1  ;;  %v1448_v37 = vadd.f32 %v1447_v46, %v3678_v55  ;;  %v2926_v55 = vld [vmem:[%s3808_s9] ss:$0 sm:$0xff] }
 0x2eb   : > { %v1972_v53 = vadd.f32 %v1942_v52, %v1428_v49 }
 0x2ed   : > { %v1992_v57 = vadd.f32 %v3684_v58, %v1972_v53 }
 0x2ef   : > { %vm2008_vm14 = vcmp.ge.f32.partialorder %v1992_v57, 0.0  ;;  %v2025_v48 = vmul.f32 %v3688_v62, %v1992_v57 }
 0x2f1   : > { %v2041_v42 = vsel %vm2008_vm14, %v1992_v57, %v2025_v48 }
 0x2f2   : > { %v1945_v59 = vpop.f32.mrf.mxu1  ;;  %v2053_v60 = vpack.c.bf16 %v2041_v42, %v2040_v27 }
 0x2f3   : > { %v1973_v51 = vadd.f32 %v1945_v59, %v1431_v63 }
 0x2f4   : > { %2754 = vmatmul.msk.bf16.gmra.mxu3 %vm699_vm2, %v2053_v60 }
 0x2f5   : > { %v1993_v3 = vadd.f32 %v3684_v58, %v1973_v51 }
 0x2f7   : > { %v2026_v5 = vmul.f32 %v3688_v62, %v1993_v3  ;;  %vm2009_vm15 = vcmp.ge.f32.partialorder %v1993_v3, 0.0 }
 0x2f9   : > { %v2042_v61 = vsel %vm2009_vm15, %v1993_v3, %v2026_v5 }
 0x2fa   : > { %v1947_v12 = vpop.f32.mrf.mxu1 }
 0x2fb   : > { %v1974_v4 = vadd.f32 %v1947_v12, %v1433_v2 }
 0x2fd   : > { %v1994_v6 = vadd.f32 %v3684_v58, %v1974_v4 }
 0x2ff   : > { %vm2010_vm0 = vcmp.ge.f32.partialorder %v1994_v6, 0.0  ;;  %v2027_v7 = vmul.f32 %v3688_v62, %v1994_v6 }
 0x301   : > { %v2043_v8 = vsel %vm2010_vm0, %v1994_v6, %v2027_v7 }
 0x302   : > { %v1950_v10 = vpop.f32.mrf.mxu1  ;;  %v2054_v11 = vpack.c.bf16 %v2043_v8, %v2042_v61 }
 0x303   : > { %v1975_v1 = vadd.f32 %v1950_v10, %v1436_v14 }
 0x304   : > { %2755 = vmatmul.msk.bf16.gmra.mxu3 %vm699_vm2, %v2054_v11 }
 0x305   : > { %v1995_v16 = vadd.f32 %v3684_v58, %v1975_v1 }
 0x307   : > { %v2028_v21 = vmul.f32 %v3688_v62, %v1995_v16  ;;  %vm2011_vm1 = vcmp.ge.f32.partialorder %v1995_v16, 0.0 }
 0x309   : > { %v2044_v22 = vsel %vm2011_vm1, %v1995_v16, %v2028_v21 }
 0x30a   : > { %v1952_v44 = vpop.f32.mrf.mxu1 }
 0x30b   : > { %v1976_v19 = vadd.f32 %v1952_v44, %v1438_v15 }
 0x30d   : > { %v1996_v24 = vadd.f32 %v3684_v58, %v1976_v19 }
 0x30f   : > { %vm2012_vm3 = vcmp.ge.f32.partialorder %v1996_v24, 0.0  ;;  %v2029_v47 = vmul.f32 %v3688_v62, %v1996_v24 }
 0x311   : > { %v2045_v9 = vsel %vm2012_vm3, %v1996_v24, %v2029_v47 }
 0x312   : > { %v1955_v25 = vpop.f32.mrf.mxu1  ;;  %v2055_v28 = vpack.c.bf16 %v2045_v9, %v2044_v22 }
 0x313   : > { %v1977_v29 = vadd.f32 %v1955_v25, %v1441_v20 }
 0x314   : > { %2756 = vmatmul.msk.bf16.gmra.mxu3 %vm699_vm2, %v2055_v28 }
 0x315   : > { %v1997_v31 = vadd.f32 %v3684_v58, %v1977_v29 }
 0x317   : > { %v2030_v35 = vmul.f32 %v3688_v62, %v1997_v31  ;;  %vm2013_vm4 = vcmp.ge.f32.partialorder %v1997_v31, 0.0 }
 0x319   : > { %v2046_v23 = vsel %vm2013_vm4, %v1997_v31, %v2030_v35 }
 0x31a   : > { %v1957_v33 = vpop.f32.mrf.mxu1 }
 0x31b   : > { %v1978_v34 = vadd.f32 %v1957_v33, %v1443_v30 }
 0x31d   : > { %v1998_v54 = vadd.f32 %v3684_v58, %v1978_v34 }
 0x31f   : > { %vm2014_vm5 = vcmp.ge.f32.partialorder %v1998_v54, 0.0  ;;  %v2031_v39 = vmul.f32 %v3688_v62, %v1998_v54 }
 0x321   : > { %v2047_v26 = vsel %vm2014_vm5, %v1998_v54, %v2031_v39 }
 0x322   : > { %v1960_v40 = vpop.f32.mrf.mxu1  ;;  %v2056_v41 = vpack.c.bf16 %v2047_v26, %v2046_v23 }
 0x323   : > { %v1979_v36 = vadd.f32 %v1960_v40, %v1446_v43 }
 0x324   : > { %2757 = vmatmul.msk.bf16.gmra.mxu3 %vm699_vm2, %v2056_v41 }
 0x325   : > { %v1999_v49 = vadd.f32 %v3684_v58, %v1979_v36 }
 0x327   : > { %v2032_v53 = vmul.f32 %v3688_v62, %v1999_v49  ;;  %vm2015_vm6 = vcmp.ge.f32.partialorder %v1999_v49, 0.0 }
 0x329   : > { %v2048_v45 = vsel %vm2015_vm6, %v1999_v49, %v2032_v53 }
 0x32a   : > { %v1962_v50 = vpop.f32.mrf.mxu1 }
 0x32b   : > { %v1980_v52 = vadd.f32 %v1962_v50, %v1448_v37 }
 0x32d   : > { %v2000_v56 = vadd.f32 %v3684_v58, %v1980_v52 }
 0x32f   : > { %vm2016_vm7 = vcmp.ge.f32.partialorder %v2000_v56, 0.0  ;;  %v2033_v32 = vmul.f32 %v3688_v62, %v2000_v56 }
 0x331   : > { %v2049_v57 = vsel %vm2016_vm7, %v2000_v56, %v2033_v32 }
 0x332   : > { %v2057_v48 = vpack.c.bf16 %v2049_v57, %v2048_v45 }
 0x334   : > { %2758 = vmatmul.msk.bf16.gmra.mxu3 %vm699_vm2, %v2057_v48 }
 0x347   : > { %v2127_v27 = vpop.f32.mrf.mxu3 }
 0x348   : > { %v2128_v42 = vadd.f32 %v2926_v55, %v2127_v27 }
 0x34a   : > { %2167 = vst [vmem:[%s3747_s16] sm:$0xff] %v2128_v42 }
 0x34f   : > { %v2129_v58 = vpop.f32.mrf.mxu3 }
 0x350   : > { %v2130_v62 = vadd.f32 %v2926_v55, %v2129_v58 }
 0x352   : > { %2168 = vst [vmem:[%s3747_s16 + $0x8] sm:$0xff] %v2130_v62 }
 0x357   : > { %v2132_v59 = vpop.f32.mrf.mxu3 }
 0x358   : > { %v2133_v60 = vadd.f32 %v2926_v55, %v2132_v59 }
 0x35a   : > { %2169 = vst [vmem:[%s3747_s16 + $0x10] sm:$0xff] %v2133_v60 }
 0x35f   : > { %v2134_v63 = vpop.f32.mrf.mxu3 }
 0x360   : > { %v2135_v51 = vadd.f32 %v2926_v55, %v2134_v63 }
 0x362   : > { %2170 = vst [vmem:[%s3747_s16 + $0x18] sm:$0xff] %v2135_v51 }
 0x367   : > { %v2137_v0 = vpop.f32.mrf.mxu3 }
 0x368   : > { %v2138_v2 = vadd.f32 %v2926_v55, %v2137_v0 }
 0x36a   : > { %2171 = vst [vmem:[%s3747_s16 + $0x20] sm:$0xff] %v2138_v2 }
 0x36f   : > { %v2139_v3 = vpop.f32.mrf.mxu3 }
 0x370   : > { %v2140_v12 = vadd.f32 %v2926_v55, %v2139_v3 }
 0x372   : > { %2172 = vst [vmem:[%s3747_s16 + $0x28] sm:$0xff] %v2140_v12 }
 0x377   : > { %v2142_v4 = vpop.f32.mrf.mxu3 }
 0x378   : > { %v2143_v5 = vadd.f32 %v2926_v55, %v2142_v4 }
 0x37a   : > { %2173 = vst [vmem:[%s3747_s16 + $0x30] sm:$0xff] %v2143_v5 }
 0x37f   : > { %v2144_v6 = vpop.f32.mrf.mxu3 }
 0x380   : > { %v2145_v7 = vadd.f32 %v2926_v55, %v2144_v6 }
 0x382   : > { %2174 = vst [vmem:[%s3747_s16 + $0x38] sm:$0xff] %v2145_v7 }
 0x387   : > { %v2147_v13 = vpop.f32.mrf.mxu3 }
 0x388   : > { %v2148_v61 = vadd.f32 %v2926_v55, %v2147_v13 }
 0x38a   : > { %2175 = vst [vmem:[%s3747_s16 + $0x40] sm:$0xff] %v2148_v61 }
 0x38f   : > { %v2149_v8 = vpop.f32.mrf.mxu3 }
 0x390   : > { %v2150_v10 = vadd.f32 %v2926_v55, %v2149_v8 }
 0x392   : > { %2176 = vst [vmem:[%s3747_s16 + $0x48] sm:$0xff] %v2150_v10 }
 0x397   : > { %v2152_v11 = vpop.f32.mrf.mxu3 }
 0x398   : > { %v2153_v14 = vadd.f32 %v2926_v55, %v2152_v11 }
 0x39a   : > { %2177 = vst [vmem:[%s3747_s16 + $0x50] sm:$0xff] %v2153_v14 }
 0x39f   : > { %v2154_v1 = vpop.f32.mrf.mxu3 }
 0x3a0   : > { %v2155_v15 = vadd.f32 %v2926_v55, %v2154_v1 }
 0x3a2   : > { %2178 = vst [vmem:[%s3747_s16 + $0x58] sm:$0xff] %v2155_v15 }
 0x3a7   : > { %v2157_v16 = vpop.f32.mrf.mxu3 }
 0x3a8   : > { %v2158_v18 = vadd.f32 %v2926_v55, %v2157_v16 }
 0x3aa   : > { %2179 = vst [vmem:[%s3747_s16 + $0x60] sm:$0xff] %v2158_v18 }
 0x3af   : > { %v2159_v44 = vpop.f32.mrf.mxu3 }
 0x3b0   : > { %v2160_v19 = vadd.f32 %v2926_v55, %v2159_v44 }
 0x3b2   : > { %2180 = vst [vmem:[%s3747_s16 + $0x68] sm:$0xff] %v2160_v19 }
 0x3b7   : > { %v2162_v21 = vpop.f32.mrf.mxu3 }
 0x3b8   : > { %v2163_v24 = vadd.f32 %v2926_v55, %v2162_v21 }
 0x3ba   : > { %2181 = vst [vmem:[%s3747_s16 + $0x70] sm:$0xff] %v2163_v24 }
 0x3bf   : > { %v2164_v47 = vpop.f32.mrf.mxu3 }
 0x3c0   : > { %v2165_v22 = vadd.f32 %v2926_v55, %v2164_v47 }
 0x3c2   : > { %2182 = vst [vmem:[%s3747_s16 + $0x78] sm:$0xff] %v2165_v22 }
 0x3c3   : > { %2969 = shalt.err (!%p2966_p9)
}
 0x3c4   : > { %s3021_s15 = smov 128   ;;  %s3022_s11 = smov 8  }
 0x3c5   : > { %2865 = dma.vmem_to_hbm [thread:$0]  (%p3130_p11), %s2197_s12, 2048, %s2199_s30, %s2184_s21, %s3021_s15, %s3021_s15, %s3022_s11  }
 0x3c6 PF: > { %s2213_s19 = sand.u32 1, %s3000_s13   ;;  %p2872_p10 = pnand %p2287_p2, %p3134_p12 }
 0x3c7   : > { %s2214_s22 = scalar_lea.sflag [#allocation4], %s2213_s19 }
 0x3c8   : > { %p2873_p13 = pneg %p2872_p10 }
 0x3ca   : > { %2995 = dma.done.wait (%p2873_p13), %s2214_s22, 2048  }
 0x3cb   : > { %2997 = vsyncadd (%p2873_p13), %s2214_s22, 4294965248  ;;  %s3826_s16 = sld [smem:[#allocation16_spill]]  ;;  %s3829_s13 = smov %s3004_s14 }
 0x3cc   : > { %s3827_s23 = sld [smem:[#allocation14_spill]] }
 0x3cd   : > { %s3828_s15 = sld [smem:[#allocation17_spill]] }
 0x3d1   : > { %p24_p1 = scmp.ge.s32.totalorder %s3826_s16, 4  }
 0x3d2   : > { %s3830_s14 = smov %s3827_s23 }
 0x3d3   :  { %26 = sbr.rel (!%p24_p1) target bundleno = 8 (0x8), region = 127 }
 0x3d8   :  { %2220 = vsyncpa [#allocation3], 1 }
 0x3d9   :  { %2222 = vsyncpa [#allocation3 + $0x1], 1 }
 0x3da   :  { %2223 = vsyncpa [#allocation4], 1 }
 0x3db   :  { %2225 = vsyncpa [#allocation4 + $0x1], 1 }
 0x3dc   :  { %2226 = vsyncpa [#allocation5], 1 }
 0x3dd   :  { %2228 = vsyncpa [#allocation5 + $0x1], 1 }

</bundles_post_ra>
